<compile_context>
chip_gen: v6e
topology: v6e:2x2x1
jax: 0.10.0
libtpu: 0.0.40
codegen_flags: <defaults>
</compile_context>

<pallas_src>
import functools

import numpy as np
import jax
import jax.numpy as jnp
from jax.experimental import pallas as pl
from jax.experimental.pallas import tpu as pltpu


def _round_up(x, m):
    return (x + m - 1) // m * m


def _vmem_limit_bytes():
    """Generation-aware scoped-VMEM limit (v5e/v6e: 128 MiB phys, v7x: 64 MiB)."""
    cap = 64 * 1024 * 1024                       # conservative (v7x) default
    try:
        info = pltpu.get_tpu_info()
        cap = int(getattr(info, "vmem_capacity_bytes", cap) or cap)
    except Exception:
        pass
    return int(min(cap * 3 // 4, 100 * 1024 * 1024))


def _fit_rows(row_bytes, const_bytes, vmem_limit, rows_cap, rows_max):
    """Largest multiple-of-8 row count whose rough VMEM estimate fits budget."""
    budget = int(vmem_limit * 0.6)
    fit = ((budget - const_bytes) // max(row_bytes, 1)) // 8 * 8
    return int(max(8, min(rows_cap, rows_max, max(fit, 8))))


def _const_spec(shape, single_buffer):
    """BlockSpec for grid-invariant operands (weights / folded BN params).

    Their index_map is constant, so double-buffering them is pure VMEM waste:
    request a single buffer via pipeline_mode=pl.Buffered(1).
    """
    idx = lambda b, t: (0,) * len(shape)
    if single_buffer:
        return pl.BlockSpec(shape, idx, pipeline_mode=pl.Buffered(1))
    return pl.BlockSpec(shape, idx)


def _with_single_buffer_fallback(run):
    """Prefer single-buffered constant operands; fall back to default buffering
    if this Pallas build rejects pipeline_mode=pl.Buffered(1)."""
    try:
        return run(True)
    except Exception:
        return run(False)


def _fold_bn(p, eps=1e-5):
    """Fold conv bias + BatchNorm (running stats) into per-channel scale/shift."""
    scale = p["gamma"] / jnp.sqrt(p["running_var"] + eps)
    shift = p["beta"] - p["running_mean"] * scale + p["b"] * scale
    return scale, shift


# ------------------------- fused whole-stack kernel --------------------------
def _tdnn_stack_kernel(x_ref, *args, layers, t_tile, t_true, cdtype):
    """Fused TDNN stack for one (batch, time-tile) grid cell.

    x_ref: (1, Twin, Cin0_pad) pre-windowed input tile; row j holds global time
           step t0 - H + j (already zero outside the true sequence).
    args = (w_0, scale_0, shift_0, ..., w_{L-1}, scale_{L-1}, shift_{L-1}, o_ref)
      w_l:     (K_l, Cin_l_pad, Cout_l_pad)  conv taps (compute dtype)
      scale_l: (1, Cout_l_pad)  f32 folded BN scale
      shift_l: (1, Cout_l_pad)  f32 folded BN shift (includes conv bias)
    layers: static (K, D, P, R, res_add) per layer; R = output halo rows.
    """
    o_ref = args[-1]
    t0 = pl.program_id(1) * t_tile
    n_layers = len(layers)
    cur = None                                   # activations of previous layer

    for l, (K, D, P, R, res_add) in enumerate(layers):
        w_ref, scale_ref, shift_ref = args[3 * l:3 * l + 3]
        t_out = t_tile + 2 * R

        # K accumulated MXU matmuls (no im2col concat copy); layer 0 reads its
        # taps directly from the windowed input ref (no materialized `cur`).
        acc = None
        for k in range(K):
            if l == 0:
                lhs = x_ref[0, pl.ds(k * D, t_out), :]
            else:
                lhs = jax.lax.slice_in_dim(cur, k * D, k * D + t_out, axis=0)
            part = jnp.dot(lhs, w_ref[k], preferred_element_type=jnp.float32)
            acc = part if acc is None else acc + part

        y = acc * scale_ref[...] + shift_ref[...]   # folded BN (+ conv bias)
        y = jnp.maximum(y, 0.0)                     # ReLU

        if res_add:                                 # fused residual add
            prev = jax.lax.slice_in_dim(cur, P, P + t_out, axis=0)
            y = y + prev.astype(y.dtype)

        if l < n_layers - 1:
            # Zero rows outside the true sequence so they act as the next
            # layer's conv zero padding (only boundary tiles actually change).
            rows = t0 - R + jax.lax.broadcasted_iota(jnp.int32, (t_out, 1), 0)
            y = jnp.where((rows >= 0) & (rows < t_true), y, 0.0)
            cur = y.astype(cdtype)                  # keep intermediates narrow
        else:
            o_ref[0] = y.astype(o_ref.dtype)


def _tdnn_forward_fused(params, x, *, kernel_sizes, strides, dilations,
                        residual, t_tile_max=512, compute_dtype=None):
    """Whole stack in one pallas_call.  Requires stride 1 + 'same' padding."""
    assert all(s == 1 for s in strides)
    B, T, cin0 = x.shape
    L = len(params)
    dims = [cin0] + [int(p["w"].shape[2]) for p in params]
    pads = [dilations[l] * (kernel_sizes[l] - 1) // 2 for l in range(L)]
    halos_out = [sum(pads[l + 1:]) for l in range(L)]   # R_l
    H = sum(pads)                                       # stack input halo
    halo = _round_up(H, 8)

    cdtype = jnp.bfloat16 if compute_dtype is None else jnp.dtype(compute_dtype)
    bpe = jnp.dtype(cdtype).itemsize
    obpe = jnp.dtype(x.dtype).itemsize
    cp = [_round_up(c, 128) for c in dims]              # lane-dense channel dims

    # Generation-aware VMEM budget and time-tile choice.
    vmem_limit = _vmem_limit_bytes()
    w_bytes = sum(kernel_sizes[l] * cp[l] * cp[l + 1] * bpe + 2 * cp[l + 1] * 4
                  for l in range(L))
    row_bytes = (2 * cp[0] * bpe + 2 * cp[-1] * obpe
                 + (8 + 2 * bpe) * max(cp))             # intermediates (rough)
    const_bytes = 4 * halo * cp[0] * bpe + w_bytes + (2 << 20)
    t_tile = _fit_rows(row_bytes, const_bytes, vmem_limit,
                       _round_up(T, 8), max(8, t_tile_max // 8 * 8))
    n_t = -(-T // t_tile)
    twin = t_tile + 2 * halo

    # Single zero-pad of the input (stack halo + channel pad), then pre-window
    # it once in HBM so each grid step gets one lane-dense block: no in-kernel
    # halo concat / copy, single fully pipelined input stream.
    t_pad_len = (n_t - 1) * t_tile + twin
    x_pad = jnp.pad(x.astype(cdtype),
                    ((0, 0), (H, t_pad_len - H - T), (0, cp[0] - cin0)))
    wins = [x_pad[:, t * t_tile:t * t_tile + twin, :] for t in range(n_t)]
    x_win = jnp.stack(wins, axis=1).reshape(B * n_t, twin, cp[0])

    layer_meta, layer_inputs, const_shapes = [], [], []
    for l, p in enumerate(params):
        K = kernel_sizes[l]
        w = jnp.pad(p["w"], ((0, 0), (0, cp[l] - dims[l]),
                             (0, cp[l + 1] - dims[l + 1]))).astype(cdtype)
        scale, shift = _fold_bn(p)
        scale = jnp.pad(scale, (0, cp[l + 1] - dims[l + 1]))[None, :].astype(jnp.float32)
        shift = jnp.pad(shift, (0, cp[l + 1] - dims[l + 1]))[None, :].astype(jnp.float32)
        res_add = bool(residual and l > 0 and dims[l] == dims[l + 1])
        layer_meta.append((K, dilations[l], pads[l], halos_out[l], res_add))
        layer_inputs += [w, scale, shift]
        const_shapes += [(K, cp[l], cp[l + 1]), (1, cp[l + 1]), (1, cp[l + 1])]

    flops = 2 * B * n_t * sum(
        kernel_sizes[l] * cp[l] * cp[l + 1] * (t_tile + 2 * halos_out[l])
        for l in range(L))
    bytes_accessed = (x_win.size * bpe
                      + sum(int(a.size) * a.dtype.itemsize for a in layer_inputs)
                      + B * n_t * t_tile * cp[-1] * obpe)

    kernel = functools.partial(_tdnn_stack_kernel, layers=tuple(layer_meta),
                               t_tile=t_tile, t_true=T, cdtype=cdtype)
    x_spec = pl.BlockSpec((1, twin, cp[0]), lambda b, t, n=n_t: (b * n + t, 0, 0))
    out_spec = pl.BlockSpec((1, t_tile, cp[-1]), lambda b, t: (b, t, 0))

    def run(single_buffer):
        in_specs = [x_spec] + [_const_spec(s, single_buffer) for s in const_shapes]
        return pl.pallas_call(
            kernel,
            out_shape=jax.ShapeDtypeStruct((B, n_t * t_tile, cp[-1]), x.dtype),
            grid=(B, n_t),
            in_specs=in_specs,
            out_specs=out_spec,
            compiler_params=pltpu.CompilerParams(
                dimension_semantics=("parallel", "parallel"),
                vmem_limit_bytes=int(vmem_limit)),
            cost_estimate=pl.CostEstimate(flops=int(flops), transcendentals=0,
                                          bytes_accessed=int(bytes_accessed)),
        )(x_win, *layer_inputs)

    out = _with_single_buffer_fallback(run)
    return out[:, :T, :dims[-1]]


# ---------------------- per-layer fallback (stride > 1) ----------------------
def _tdnn_layer_kernel(x_ref, w_ref, scale_ref, shift_ref, o_ref, *, tap_rows, tt):
    acc = None
    for k, r0 in enumerate(tap_rows):               # contiguous (phase-decomposed)
        lhs = x_ref[0, pl.ds(r0, tt), :]
        part = jnp.dot(lhs, w_ref[k], preferred_element_type=jnp.float32)
        acc = part if acc is None else acc + part
    y = acc * scale_ref[...] + shift_ref[...]
    o_ref[0] = jnp.maximum(y, 0.0).astype(o_ref.dtype)


def _tdnn_bn_relu_layer(x, w, scale, shift, *, kernel_size, stride, dilation,
                        t_tile_max, compute_dtype, vmem_limit):
    B, T, cin = x.shape
    K, D, S = kernel_size, dilation, stride
    P = D * (K - 1) // 2
    t_out = (T + 2 * P - D * (K - 1) + S - 1) // S
    cout = int(w.shape[2])
    cinp, coutp = _round_up(cin, 128), _round_up(cout, 128)
    cdtype = jnp.bfloat16 if compute_dtype is None else jnp.dtype(compute_dtype)
    bpe = jnp.dtype(cdtype).itemsize

    qmax = (D * (K - 1)) // S
    row_bytes = 2 * S * cinp * bpe + 2 * coutp * 4 + (8 + 2 * bpe) * max(cinp, coutp)
    const_bytes = (K * cinp * coutp * bpe
                   + 2 * S * _round_up(max(qmax, 1), 8) * cinp * bpe + (2 << 20))
    tt = _fit_rows(row_bytes, const_bytes, vmem_limit,
                   _round_up(t_out, 8), max(8, t_tile_max // 8 * 8))
    n_to = -(-t_out // tt)
    wj = _round_up(tt + qmax, 8)

    # Phase-decompose the (zero-padded) time axis by the stride so every tap is
    # a contiguous in-kernel row slice, and pre-window per output tile.
    j_len = (n_to - 1) * tt + wj
    l_len = S * j_len
    x_pad = jnp.pad(x.astype(cdtype),
                    ((0, 0), (P, max(l_len - (P + T), 0)),
                     (0, cinp - cin)))[:, :l_len, :]
    x_ph = x_pad.reshape(B, j_len, S, cinp).transpose(0, 2, 1, 3)       # (B,S,J,C)
    wins = [x_ph[:, :, to * tt:to * tt + wj, :] for to in range(n_to)]
    x_win = jnp.stack(wins, axis=1).reshape(B * n_to, S * wj, cinp)

    wp = jnp.pad(w, ((0, 0), (0, cinp - cin), (0, coutp - cout))).astype(cdtype)
    scale_p = jnp.pad(scale, (0, coutp - cout))[None, :].astype(jnp.float32)
    shift_p = jnp.pad(shift, (0, coutp - cout))[None, :].astype(jnp.float32)
    tap_rows = tuple(((k * D) % S) * wj + (k * D) // S for k in range(K))

    flops = 2 * B * n_to * tt * K * cinp * coutp
    bytes_accessed = (x_win.size * bpe + wp.size * bpe
                      + B * n_to * tt * coutp * jnp.dtype(x.dtype).itemsize)
    kernel = functools.partial(_tdnn_layer_kernel, tap_rows=tap_rows, tt=tt)
    x_spec = pl.BlockSpec((1, S * wj, cinp), lambda b, to, n=n_to: (b * n + to, 0, 0))
    out_spec = pl.BlockSpec((1, tt, coutp), lambda b, to: (b, to, 0))
    const_shapes = [(K, cinp, coutp), (1, coutp), (1, coutp)]

    def run(single_buffer):
        in_specs = [x_spec] + [_const_spec(s, single_buffer) for s in const_shapes]
        return pl.pallas_call(
            kernel,
            out_shape=jax.ShapeDtypeStruct((B, n_to * tt, coutp), x.dtype),
            grid=(B, n_to),
            in_specs=in_specs,
            out_specs=out_spec,
            compiler_params=pltpu.CompilerParams(
                dimension_semantics=("parallel", "parallel"),
                vmem_limit_bytes=int(vmem_limit)),
            cost_estimate=pl.CostEstimate(flops=int(flops), transcendentals=0,
                                          bytes_accessed=int(bytes_accessed)),
        )(x_win, wp, scale_p, shift_p)

    out = _with_single_buffer_fallback(run)
    return out[:, :t_out, :cout]


def _tdnn_forward_layerwise(params, x, *, kernel_sizes, strides, dilations,
                            residual, t_tile_max, compute_dtype):
    vmem_limit = _vmem_limit_bytes()
    for i, p in enumerate(params):
        prev_x = x
        scale, shift = _fold_bn(p)
        x = _tdnn_bn_relu_layer(x, p["w"], scale, shift,
                                kernel_size=kernel_sizes[i], stride=strides[i],
                                dilation=dilations[i], t_tile_max=t_tile_max,
                                compute_dtype=compute_dtype,
                                vmem_limit=vmem_limit)
        if residual and i > 0 and x.shape[1] == prev_x.shape[1] \
                and x.shape[2] == prev_x.shape[2]:
            x = x + prev_x
    return x


# ------------------------------- TDNN forward --------------------------------
def tdnn_forward(params, x, x_lengths=None, *, kernel_sizes, strides, dilations,
                 residual=False, t_tile_max=512, compute_dtype=None):
    """Mirrors TDNN.forward.  x: (B, T, in_dim) -> (B, T_out, hidden_dims[-1]).

    x_lengths is accepted for API parity but (like plain Conv1d) not used to
    mask padded frames.  compute_dtype defaults to bfloat16 (f32 accumulation).
    """
    del x_lengths
    L = len(params)
    same = all(strides[l] == 1 and
               (dilations[l] * (kernel_sizes[l] - 1)) % 2 == 0 for l in range(L))
    if same:
        return _tdnn_forward_fused(params, x, kernel_sizes=kernel_sizes,
                                   strides=strides, dilations=dilations,
                                   residual=residual, t_tile_max=t_tile_max,
                                   compute_dtype=compute_dtype)
    return _tdnn_forward_layerwise(params, x, kernel_sizes=kernel_sizes,
                                   strides=strides, dilations=dilations,
                                   residual=residual, t_tile_max=t_tile_max,
                                   compute_dtype=compute_dtype)


# --------------------------- parameter construction --------------------------
def init_tdnn_params(key, in_dim, num_layers, hidden_dims, kernel_sizes):
    """Deterministic synthetic parameters (conv + BatchNorm per layer)."""
    params = []
    dims = [in_dim] + list(hidden_dims)
    for layer in range(num_layers):
        cin, cout, K = dims[layer], dims[layer + 1], kernel_sizes[layer]
        key, kw, kb, kg, kbe, km, kv = jax.random.split(key, 7)
        bound = 1.0 / jnp.sqrt(cin * K)
        params.append(dict(
            w=jax.random.uniform(kw, (K, cin, cout), jnp.float32, -bound, bound),
            b=jax.random.uniform(kb, (cout,), jnp.float32, -bound, bound),
            gamma=1.0 + 0.1 * jax.random.normal(kg, (cout,), jnp.float32),
            beta=0.1 * jax.random.normal(kbe, (cout,), jnp.float32),
            running_mean=0.1 * jax.random.normal(km, (cout,), jnp.float32),
            running_var=jax.random.uniform(kv, (cout,), jnp.float32, 0.5, 1.5)))
    return params


# ------------------------ pure-JAX reference (checking) ----------------------
def _reference_forward(params, x, *, kernel_sizes, strides, dilations,
                       residual, eps=1e-5):
    x = jnp.transpose(x, (0, 2, 1))               # NCL, like the PyTorch module
    for i, p in enumerate(params):
        K, S, D = kernel_sizes[i], strides[i], dilations[i]
        P = D * (K - 1) // 2
        prev_x = x
        w = jnp.transpose(p["w"], (2, 1, 0))      # (Cout, Cin, K)
        y = jax.lax.conv_general_dilated(
            x, w, window_strides=(S,), padding=[(P, P)], rhs_dilation=(D,),
            dimension_numbers=("NCH", "OIH", "NCH"),
            precision=jax.lax.Precision.HIGHEST)
        y = y + p["b"][None, :, None]
        scale = p["gamma"] / jnp.sqrt(p["running_var"] + eps)
        y = (y - p["running_mean"][None, :, None]) * scale[None, :, None] \
            + p["beta"][None, :, None]
        x_new = jnp.maximum(y, 0.0)
        if residual and i > 0 and x_new.shape[2] == prev_x.shape[2] \
                and x_new.shape[1] == prev_x.shape[1]:
            x_new = x_new + prev_x
        x = x_new
    return jnp.transpose(x, (0, 2, 1))


# ----------------------------------- main -------------------------------------
if __name__ == "__main__":
    key = jax.random.PRNGKey(0)

    # --- fused path: 3-layer stack, stride 1, dilations [1, 2, 1] -----------
    in_dim, num_layers = 16, 3
    hidden_dims, kernel_sizes = [32, 32, 32], [3, 3, 3]
    strides, dilations = [1, 1, 1], [1, 2, 1]
    B, T = 2, 40

    key, kx = jax.random.split(key)
    x = jax.random.normal(kx, (B, T, in_dim), jnp.float32)
    params = init_tdnn_params(key, in_dim, num_layers, hidden_dims, kernel_sizes)

    # (a) multi-tile path, default bf16 compute, no residual.
    out = tdnn_forward(params, x, kernel_sizes=kernel_sizes, strides=strides,
                       dilations=dilations, residual=False, t_tile_max=16)
    out = jax.block_until_ready(out)
    assert out.shape == (B, T, hidden_dims[-1]), out.shape
    ref = _reference_forward(params, x, kernel_sizes=kernel_sizes,
                             strides=strides, dilations=dilations, residual=False)
    np.testing.assert_allclose(np.asarray(out), np.asarray(ref),
                               rtol=3e-2, atol=3e-2)

    # (b) single-tile path, residual on, f32 compute (tighter check).
    out = tdnn_forward(params, x, kernel_sizes=kernel_sizes, strides=strides,
                       dilations=dilations, residual=True,
                       compute_dtype=jnp.float32)
    out = jax.block_until_ready(out)
    assert out.shape == (B, T, hidden_dims[-1]), out.shape
    ref = _reference_forward(params, x, kernel_sizes=kernel_sizes,
                             strides=strides, dilations=dilations, residual=True)
    np.testing.assert_allclose(np.asarray(out), np.asarray(ref),
                               rtol=2e-2, atol=2e-2)

    # --- fallback path: stride 2 first layer (per-layer kernels) ------------
    ks2, st2, dl2, hd2 = [3, 3], [2, 1], [1, 1], [32, 32]
    key, kx2 = jax.random.split(key)
    x2 = jax.random.normal(kx2, (B, T, in_dim), jnp.float32)
    params2 = init_tdnn_params(key, in_dim, 2, hd2, ks2)
    out2 = tdnn_forward(params2, x2, kernel_sizes=ks2, strides=st2,
                        dilations=dl2, residual=False, t_tile_max=16)
    out2 = jax.block_until_ready(out2)
    t_out2 = (T + 2 * 1 - 1 * (3 - 1) + 2 - 1) // 2
    assert out2.shape == (B, t_out2, hd2[-1]), out2.shape
    ref2 = _reference_forward(params2, x2, kernel_sizes=ks2, strides=st2,
                              dilations=dl2, residual=False)
    np.testing.assert_allclose(np.asarray(out2), np.asarray(ref2),
                               rtol=3e-2, atol=3e-2)

    print("KERNEL_OK")
</pallas_src>

<mosaic_0001>
module attributes {stable_mosaic.version = 11 : i64} {
  func.func @_tdnn_stack_kernel(%arg0: i32, %arg1: i32, %arg2: memref<1x32x128xbf16, #tpu.memory_space<vmem>>, %arg3: memref<3x128x128xbf16, #tpu.memory_space<vmem>>, %arg4: memref<1x128xf32, #tpu.memory_space<vmem>>, %arg5: memref<1x128xf32, #tpu.memory_space<vmem>>, %arg6: memref<3x128x128xbf16, #tpu.memory_space<vmem>>, %arg7: memref<1x128xf32, #tpu.memory_space<vmem>>, %arg8: memref<1x128xf32, #tpu.memory_space<vmem>>, %arg9: memref<3x128x128xbf16, #tpu.memory_space<vmem>>, %arg10: memref<1x128xf32, #tpu.memory_space<vmem>>, %arg11: memref<1x128xf32, #tpu.memory_space<vmem>>, %arg12: memref<1x16x128xf32, #tpu.memory_space<vmem>>) attributes {dimension_semantics = [#tpu.dimension_semantics<parallel>, #tpu.dimension_semantics<parallel>], iteration_bounds = array<i64: 2, 3>, scalar_prefetch = 0 : i64, scratch_operands = 0 : i64, tpu.core_type = #tpu.core_type<tc>, window_params = [{transform_indices = @transform_0, window_bounds = array<i64: 1, 32, 128>}, {pipeline_mode = #tpu.pipeline_mode<synchronous>, transform_indices = @transform_1, window_bounds = array<i64: 3, 128, 128>}, {pipeline_mode = #tpu.pipeline_mode<synchronous>, transform_indices = @transform_2, window_bounds = array<i64: 1, 128>}, {pipeline_mode = #tpu.pipeline_mode<synchronous>, transform_indices = @transform_3, window_bounds = array<i64: 1, 128>}, {pipeline_mode = #tpu.pipeline_mode<synchronous>, transform_indices = @transform_4, window_bounds = array<i64: 3, 128, 128>}, {pipeline_mode = #tpu.pipeline_mode<synchronous>, transform_indices = @transform_5, window_bounds = array<i64: 1, 128>}, {pipeline_mode = #tpu.pipeline_mode<synchronous>, transform_indices = @transform_6, window_bounds = array<i64: 1, 128>}, {pipeline_mode = #tpu.pipeline_mode<synchronous>, transform_indices = @transform_7, window_bounds = array<i64: 3, 128, 128>}, {pipeline_mode = #tpu.pipeline_mode<synchronous>, transform_indices = @transform_8, window_bounds = array<i64: 1, 128>}, {pipeline_mode = #tpu.pipeline_mode<synchronous>, transform_indices = @transform_9, window_bounds = array<i64: 1, 128>}, {transform_indices = @transform_10, window_bounds = array<i64: 1, 16, 128>}]} {
    %c16_i32 = arith.constant 16 : i32
    %0 = arith.muli %arg1, %c16_i32 : i32
    %c0 = arith.constant 0 : index
    %c0_0 = arith.constant 0 : index
    %c0_1 = arith.constant 0 : index
    %1 = vector.load %arg2[%c0, %c0_0, %c0_1] : memref<1x32x128xbf16, #tpu.memory_space<vmem>>, vector<1x22x128xbf16>
    %2 = vector.shape_cast %1 : vector<1x22x128xbf16> to vector<22x128xbf16>
    %c0_2 = arith.constant 0 : index
    %c0_3 = arith.constant 0 : index
    %c0_4 = arith.constant 0 : index
    %3 = vector.load %arg3[%c0_2, %c0_3, %c0_4] : memref<3x128x128xbf16, #tpu.memory_space<vmem>>, vector<1x128x128xbf16>
    %4 = vector.shape_cast %3 : vector<1x128x128xbf16> to vector<128x128xbf16>
    %cst = arith.constant dense<0.000000e+00> : vector<22x128xf32>
    %5 = tpu.matmul %2, %4, %cst {dimension_numbers = #tpu.dot_dimension_numbers<[1], [0], [0], [1], [0, 0, 1, 1], [], []>} : vector<22x128xbf16>, vector<128x128xbf16>, vector<22x128xf32> -> vector<22x128xf32>
    %c0_5 = arith.constant 0 : index
    %c1 = arith.constant 1 : index
    %c0_6 = arith.constant 0 : index
    %6 = vector.load %arg2[%c0_5, %c1, %c0_6] : memref<1x32x128xbf16, #tpu.memory_space<vmem>>, vector<1x22x128xbf16>
    %7 = vector.shape_cast %6 : vector<1x22x128xbf16> to vector<22x128xbf16>
    %c1_7 = arith.constant 1 : index
    %c0_8 = arith.constant 0 : index
    %c0_9 = arith.constant 0 : index
    %8 = vector.load %arg3[%c1_7, %c0_8, %c0_9] : memref<3x128x128xbf16, #tpu.memory_space<vmem>>, vector<1x128x128xbf16>
    %9 = vector.shape_cast %8 : vector<1x128x128xbf16> to vector<128x128xbf16>
    %cst_10 = arith.constant dense<0.000000e+00> : vector<22x128xf32>
    %10 = tpu.matmul %7, %9, %cst_10 {dimension_numbers = #tpu.dot_dimension_numbers<[1], [0], [0], [1], [0, 0, 1, 1], [], []>} : vector<22x128xbf16>, vector<128x128xbf16>, vector<22x128xf32> -> vector<22x128xf32>
    %11 = arith.addf %5, %10 : vector<22x128xf32>
    %c0_11 = arith.constant 0 : index
    %c2 = arith.constant 2 : index
    %c0_12 = arith.constant 0 : index
    %12 = vector.load %arg2[%c0_11, %c2, %c0_12] : memref<1x32x128xbf16, #tpu.memory_space<vmem>>, vector<1x22x128xbf16>
    %13 = vector.shape_cast %12 : vector<1x22x128xbf16> to vector<22x128xbf16>
    %c2_13 = arith.constant 2 : index
    %c0_14 = arith.constant 0 : index
    %c0_15 = arith.constant 0 : index
    %14 = vector.load %arg3[%c2_13, %c0_14, %c0_15] : memref<3x128x128xbf16, #tpu.memory_space<vmem>>, vector<1x128x128xbf16>
    %15 = vector.shape_cast %14 : vector<1x128x128xbf16> to vector<128x128xbf16>
    %cst_16 = arith.constant dense<0.000000e+00> : vector<22x128xf32>
    %16 = tpu.matmul %13, %15, %cst_16 {dimension_numbers = #tpu.dot_dimension_numbers<[1], [0], [0], [1], [0, 0, 1, 1], [], []>} : vector<22x128xbf16>, vector<128x128xbf16>, vector<22x128xf32> -> vector<22x128xf32>
    %17 = arith.addf %11, %16 : vector<22x128xf32>
    %c0_17 = arith.constant 0 : index
    %c0_18 = arith.constant 0 : index
    %18 = vector.load %arg4[%c0_17, %c0_18] : memref<1x128xf32, #tpu.memory_space<vmem>>, vector<1x128xf32>
    %19 = vector.broadcast %18 : vector<1x128xf32> to vector<22x128xf32>
    %20 = arith.mulf %17, %19 : vector<22x128xf32>
    %c0_19 = arith.constant 0 : index
    %c0_20 = arith.constant 0 : index
    %21 = vector.load %arg5[%c0_19, %c0_20] : memref<1x128xf32, #tpu.memory_space<vmem>>, vector<1x128xf32>
    %22 = vector.broadcast %21 : vector<1x128xf32> to vector<22x128xf32>
    %23 = arith.addf %20, %22 : vector<22x128xf32>
    %cst_21 = arith.constant 0.000000e+00 : f32
    %24 = vector.broadcast %cst_21 : f32 to vector<22x128xf32>
    %25 = arith.maximumf %23, %24 : vector<22x128xf32>
    %c3_i32 = arith.constant 3 : i32
    %26 = arith.subi %0, %c3_i32 : i32
    %27 = tpu.iota {dimensions = array<i32: 0>} : vector<22x1xi32>
    %28 = vector.broadcast %26 : i32 to vector<22x1xi32>
    %29 = arith.addi %28, %27 : vector<22x1xi32>
    %c0_i32 = arith.constant 0 : i32
    %30 = vector.broadcast %c0_i32 : i32 to vector<22x1xi32>
    %31 = arith.cmpi sge, %29, %30 : vector<22x1xi32>
    %c40_i32 = arith.constant 40 : i32
    %32 = vector.broadcast %c40_i32 : i32 to vector<22x1xi32>
    %33 = arith.cmpi slt, %29, %32 : vector<22x1xi32>
    %34 = arith.andi %31, %33 : vector<22x1xi1>
    %cst_22 = arith.constant 0.000000e+00 : f32
    %35 = vector.shape_cast %34 : vector<22x1xi1> to vector<22x1xi1>
    %36 = vector.broadcast %35 : vector<22x1xi1> to vector<22x128xi1>
    %37 = vector.broadcast %cst_22 : f32 to vector<22x128xf32>
    %38 = arith.select %36, %25, %37 : vector<22x128xi1>, vector<22x128xf32>
    %39 = arith.truncf %38 : vector<22x128xf32> to vector<22x128xbf16>
    %40 = vector.extract_strided_slice %39 {offsets = [0, 0], sizes = [18, 128], strides = [1, 1]} : vector<22x128xbf16> to vector<18x128xbf16>
    %c0_23 = arith.constant 0 : index
    %c0_24 = arith.constant 0 : index
    %c0_25 = arith.constant 0 : index
    %41 = vector.load %arg6[%c0_23, %c0_24, %c0_25] : memref<3x128x128xbf16, #tpu.memory_space<vmem>>, vector<1x128x128xbf16>
    %42 = vector.shape_cast %41 : vector<1x128x128xbf16> to vector<128x128xbf16>
    %cst_26 = arith.constant dense<0.000000e+00> : vector<18x128xf32>
    %43 = tpu.matmul %40, %42, %cst_26 {dimension_numbers = #tpu.dot_dimension_numbers<[1], [0], [0], [1], [0, 0, 1, 1], [], []>} : vector<18x128xbf16>, vector<128x128xbf16>, vector<18x128xf32> -> vector<18x128xf32>
    %44 = vector.extract_strided_slice %39 {offsets = [2, 0], sizes = [18, 128], strides = [1, 1]} : vector<22x128xbf16> to vector<18x128xbf16>
    %c1_27 = arith.constant 1 : index
    %c0_28 = arith.constant 0 : index
    %c0_29 = arith.constant 0 : index
    %45 = vector.load %arg6[%c1_27, %c0_28, %c0_29] : memref<3x128x128xbf16, #tpu.memory_space<vmem>>, vector<1x128x128xbf16>
    %46 = vector.shape_cast %45 : vector<1x128x128xbf16> to vector<128x128xbf16>
    %cst_30 = arith.constant dense<0.000000e+00> : vector<18x128xf32>
    %47 = tpu.matmul %44, %46, %cst_30 {dimension_numbers = #tpu.dot_dimension_numbers<[1], [0], [0], [1], [0, 0, 1, 1], [], []>} : vector<18x128xbf16>, vector<128x128xbf16>, vector<18x128xf32> -> vector<18x128xf32>
    %48 = arith.addf %43, %47 : vector<18x128xf32>
    %49 = vector.extract_strided_slice %39 {offsets = [4, 0], sizes = [18, 128], strides = [1, 1]} : vector<22x128xbf16> to vector<18x128xbf16>
    %c2_31 = arith.constant 2 : index
    %c0_32 = arith.constant 0 : index
    %c0_33 = arith.constant 0 : index
    %50 = vector.load %arg6[%c2_31, %c0_32, %c0_33] : memref<3x128x128xbf16, #tpu.memory_space<vmem>>, vector<1x128x128xbf16>
    %51 = vector.shape_cast %50 : vector<1x128x128xbf16> to vector<128x128xbf16>
    %cst_34 = arith.constant dense<0.000000e+00> : vector<18x128xf32>
    %52 = tpu.matmul %49, %51, %cst_34 {dimension_numbers = #tpu.dot_dimension_numbers<[1], [0], [0], [1], [0, 0, 1, 1], [], []>} : vector<18x128xbf16>, vector<128x128xbf16>, vector<18x128xf32> -> vector<18x128xf32>
    %53 = arith.addf %48, %52 : vector<18x128xf32>
    %c0_35 = arith.constant 0 : index
    %c0_36 = arith.constant 0 : index
    %54 = vector.load %arg7[%c0_35, %c0_36] : memref<1x128xf32, #tpu.memory_space<vmem>>, vector<1x128xf32>
    %55 = vector.broadcast %54 : vector<1x128xf32> to vector<18x128xf32>
    %56 = arith.mulf %53, %55 : vector<18x128xf32>
    %c0_37 = arith.constant 0 : index
    %c0_38 = arith.constant 0 : index
    %57 = vector.load %arg8[%c0_37, %c0_38] : memref<1x128xf32, #tpu.memory_space<vmem>>, vector<1x128xf32>
    %58 = vector.broadcast %57 : vector<1x128xf32> to vector<18x128xf32>
    %59 = arith.addf %56, %58 : vector<18x128xf32>
    %cst_39 = arith.constant 0.000000e+00 : f32
    %60 = vector.broadcast %cst_39 : f32 to vector<18x128xf32>
    %61 = arith.maximumf %59, %60 : vector<18x128xf32>
    %c1_i32 = arith.constant 1 : i32
    %62 = arith.subi %0, %c1_i32 : i32
    %63 = tpu.iota {dimensions = array<i32: 0>} : vector<18x1xi32>
    %64 = vector.broadcast %62 : i32 to vector<18x1xi32>
    %65 = arith.addi %64, %63 : vector<18x1xi32>
    %c0_i32_40 = arith.constant 0 : i32
    %66 = vector.broadcast %c0_i32_40 : i32 to vector<18x1xi32>
    %67 = arith.cmpi sge, %65, %66 : vector<18x1xi32>
    %c40_i32_41 = arith.constant 40 : i32
    %68 = vector.broadcast %c40_i32_41 : i32 to vector<18x1xi32>
    %69 = arith.cmpi slt, %65, %68 : vector<18x1xi32>
    %70 = arith.andi %67, %69 : vector<18x1xi1>
    %cst_42 = arith.constant 0.000000e+00 : f32
    %71 = vector.shape_cast %70 : vector<18x1xi1> to vector<18x1xi1>
    %72 = vector.broadcast %71 : vector<18x1xi1> to vector<18x128xi1>
    %73 = vector.broadcast %cst_42 : f32 to vector<18x128xf32>
    %74 = arith.select %72, %61, %73 : vector<18x128xi1>, vector<18x128xf32>
    %75 = arith.truncf %74 : vector<18x128xf32> to vector<18x128xbf16>
    %76 = vector.extract_strided_slice %75 {offsets = [0, 0], sizes = [16, 128], strides = [1, 1]} : vector<18x128xbf16> to vector<16x128xbf16>
    %c0_43 = arith.constant 0 : index
    %c0_44 = arith.constant 0 : index
    %c0_45 = arith.constant 0 : index
    %77 = vector.load %arg9[%c0_43, %c0_44, %c0_45] : memref<3x128x128xbf16, #tpu.memory_space<vmem>>, vector<1x128x128xbf16>
    %78 = vector.shape_cast %77 : vector<1x128x128xbf16> to vector<128x128xbf16>
    %cst_46 = arith.constant dense<0.000000e+00> : vector<16x128xf32>
    %79 = tpu.matmul %76, %78, %cst_46 {dimension_numbers = #tpu.dot_dimension_numbers<[1], [0], [0], [1], [0, 0, 1, 1], [], []>} : vector<16x128xbf16>, vector<128x128xbf16>, vector<16x128xf32> -> vector<16x128xf32>
    %80 = vector.extract_strided_slice %75 {offsets = [1, 0], sizes = [16, 128], strides = [1, 1]} : vector<18x128xbf16> to vector<16x128xbf16>
    %c1_47 = arith.constant 1 : index
    %c0_48 = arith.constant 0 : index
    %c0_49 = arith.constant 0 : index
    %81 = vector.load %arg9[%c1_47, %c0_48, %c0_49] : memref<3x128x128xbf16, #tpu.memory_space<vmem>>, vector<1x128x128xbf16>
    %82 = vector.shape_cast %81 : vector<1x128x128xbf16> to vector<128x128xbf16>
    %cst_50 = arith.constant dense<0.000000e+00> : vector<16x128xf32>
    %83 = tpu.matmul %80, %82, %cst_50 {dimension_numbers = #tpu.dot_dimension_numbers<[1], [0], [0], [1], [0, 0, 1, 1], [], []>} : vector<16x128xbf16>, vector<128x128xbf16>, vector<16x128xf32> -> vector<16x128xf32>
    %84 = arith.addf %79, %83 : vector<16x128xf32>
    %85 = vector.extract_strided_slice %75 {offsets = [2, 0], sizes = [16, 128], strides = [1, 1]} : vector<18x128xbf16> to vector<16x128xbf16>
    %c2_51 = arith.constant 2 : index
    %c0_52 = arith.constant 0 : index
    %c0_53 = arith.constant 0 : index
    %86 = vector.load %arg9[%c2_51, %c0_52, %c0_53] : memref<3x128x128xbf16, #tpu.memory_space<vmem>>, vector<1x128x128xbf16>
    %87 = vector.shape_cast %86 : vector<1x128x128xbf16> to vector<128x128xbf16>
    %cst_54 = arith.constant dense<0.000000e+00> : vector<16x128xf32>
    %88 = tpu.matmul %85, %87, %cst_54 {dimension_numbers = #tpu.dot_dimension_numbers<[1], [0], [0], [1], [0, 0, 1, 1], [], []>} : vector<16x128xbf16>, vector<128x128xbf16>, vector<16x128xf32> -> vector<16x128xf32>
    %89 = arith.addf %84, %88 : vector<16x128xf32>
    %c0_55 = arith.constant 0 : index
    %c0_56 = arith.constant 0 : index
    %90 = vector.load %arg10[%c0_55, %c0_56] : memref<1x128xf32, #tpu.memory_space<vmem>>, vector<1x128xf32>
    %91 = vector.broadcast %90 : vector<1x128xf32> to vector<16x128xf32>
    %92 = arith.mulf %89, %91 : vector<16x128xf32>
    %c0_57 = arith.constant 0 : index
    %c0_58 = arith.constant 0 : index
    %93 = vector.load %arg11[%c0_57, %c0_58] : memref<1x128xf32, #tpu.memory_space<vmem>>, vector<1x128xf32>
    %94 = vector.broadcast %93 : vector<1x128xf32> to vector<16x128xf32>
    %95 = arith.addf %92, %94 : vector<16x128xf32>
    %cst_59 = arith.constant 0.000000e+00 : f32
    %96 = vector.broadcast %cst_59 : f32 to vector<16x128xf32>
    %97 = arith.maximumf %95, %96 : vector<16x128xf32>
    %c0_60 = arith.constant 0 : index
    %c0_61 = arith.constant 0 : index
    %c0_62 = arith.constant 0 : index
    %98 = vector.load %arg12[%c0_60, %c0_61, %c0_62] : memref<1x16x128xf32, #tpu.memory_space<vmem>>, vector<1x16x128xf32>
    %99 = vector.shape_cast %98 : vector<1x16x128xf32> to vector<16x128xf32>
    %100 = vector.shape_cast %97 : vector<16x128xf32> to vector<1x16x128xf32>
    tpu.vector_store %arg12[%c0_60, %c0_61, %c0_62], %100 {strides = array<i32>} : memref<1x16x128xf32, #tpu.memory_space<vmem>>, vector<1x16x128xf32>,
    return
  }
  func.func @transform_0(%arg0: i32, %arg1: i32) -> (i32, i32, i32) {
    %c3_i32 = arith.constant 3 : i32
    %0 = arith.muli %arg0, %c3_i32 : i32
    %1 = arith.addi %0, %arg1 : i32
    %c0_i32 = arith.constant 0 : i32
    %c0_i32_0 = arith.constant 0 : i32
    %c0_i32_1 = arith.constant 0 : i32
    return %1, %c0_i32, %c0_i32_0 : i32, i32, i32
  }
  func.func @transform_1(%arg0: i32, %arg1: i32) -> (i32, i32, i32) {
    %c0_i32 = arith.constant 0 : i32
    %c0_i32_0 = arith.constant 0 : i32
    %c0_i32_1 = arith.constant 0 : i32
    %c0_i32_2 = arith.constant 0 : i32
    return %c0_i32, %c0_i32_0, %c0_i32_1 : i32, i32, i32
  }
  func.func @transform_2(%arg0: i32, %arg1: i32) -> (i32, i32) {
    %c0_i32 = arith.constant 0 : i32
    %c0_i32_0 = arith.constant 0 : i32
    %c0_i32_1 = arith.constant 0 : i32
    return %c0_i32, %c0_i32_0 : i32, i32
  }
  func.func @transform_3(%arg0: i32, %arg1: i32) -> (i32, i32) {
    %c0_i32 = arith.constant 0 : i32
    %c0_i32_0 = arith.constant 0 : i32
    %c0_i32_1 = arith.constant 0 : i32
    return %c0_i32, %c0_i32_0 : i32, i32
  }
  func.func @transform_4(%arg0: i32, %arg1: i32) -> (i32, i32, i32) {
    %c0_i32 = arith.constant 0 : i32
    %c0_i32_0 = arith.constant 0 : i32
    %c0_i32_1 = arith.constant 0 : i32
    %c0_i32_2 = arith.constant 0 : i32
    return %c0_i32, %c0_i32_0, %c0_i32_1 : i32, i32, i32
  }
  func.func @transform_5(%arg0: i32, %arg1: i32) -> (i32, i32) {
    %c0_i32 = arith.constant 0 : i32
    %c0_i32_0 = arith.constant 0 : i32
    %c0_i32_1 = arith.constant 0 : i32
    return %c0_i32, %c0_i32_0 : i32, i32
  }
  func.func @transform_6(%arg0: i32, %arg1: i32) -> (i32, i32) {
    %c0_i32 = arith.constant 0 : i32
    %c0_i32_0 = arith.constant 0 : i32
    %c0_i32_1 = arith.constant 0 : i32
    return %c0_i32, %c0_i32_0 : i32, i32
  }
  func.func @transform_7(%arg0: i32, %arg1: i32) -> (i32, i32, i32) {
    %c0_i32 = arith.constant 0 : i32
    %c0_i32_0 = arith.constant 0 : i32
    %c0_i32_1 = arith.constant 0 : i32
    %c0_i32_2 = arith.constant 0 : i32
    return %c0_i32, %c0_i32_0, %c0_i32_1 : i32, i32, i32
  }
  func.func @transform_8(%arg0: i32, %arg1: i32) -> (i32, i32) {
    %c0_i32 = arith.constant 0 : i32
    %c0_i32_0 = arith.constant 0 : i32
    %c0_i32_1 = arith.constant 0 : i32
    return %c0_i32, %c0_i32_0 : i32, i32
  }
  func.func @transform_9(%arg0: i32, %arg1: i32) -> (i32, i32) {
    %c0_i32 = arith.constant 0 : i32
    %c0_i32_0 = arith.constant 0 : i32
    %c0_i32_1 = arith.constant 0 : i32
    return %c0_i32, %c0_i32_0 : i32, i32
  }
  func.func @transform_10(%arg0: i32, %arg1: i32) -> (i32, i32, i32) {
    %c0_i32 = arith.constant 0 : i32
    %c0_i32_0 = arith.constant 0 : i32
    return %arg0, %arg1, %c0_i32 : i32, i32, i32
  }
}

module attributes {stable_mosaic.version = 11 : i64} {
  func.func @_tdnn_stack_kernel(%arg0: i32, %arg1: i32, %arg2: memref<1x32x128xbf16, #tpu.memory_space<vmem>>, %arg3: memref<3x128x128xbf16, #tpu.memory_space<vmem>>, %arg4: memref<1x128xf32, #tpu.memory_space<vmem>>, %arg5: memref<1x128xf32, #tpu.memory_space<vmem>>, %arg6: memref<3x128x128xbf16, #tpu.memory_space<vmem>>, %arg7: memref<1x128xf32, #tpu.memory_space<vmem>>, %arg8: memref<1x128xf32, #tpu.memory_space<vmem>>, %arg9: memref<3x128x128xbf16, #tpu.memory_space<vmem>>, %arg10: memref<1x128xf32, #tpu.memory_space<vmem>>, %arg11: memref<1x128xf32, #tpu.memory_space<vmem>>, %arg12: memref<1x16x128xf32, #tpu.memory_space<vmem>>) attributes {dimension_semantics = [#tpu.dimension_semantics<parallel>, #tpu.dimension_semantics<parallel>], iteration_bounds = array<i64: 2, 3>, scalar_prefetch = 0 : i64, scratch_operands = 0 : i64, tpu.core_type = #tpu.core_type<tc>, window_params = [{transform_indices = @transform_0, window_bounds = array<i64: 1, 32, 128>}, {pipeline_mode = #tpu.pipeline_mode<synchronous>, transform_indices = @transform_1, window_bounds = array<i64: 3, 128, 128>}, {pipeline_mode = #tpu.pipeline_mode<synchronous>, transform_indices = @transform_2, window_bounds = array<i64: 1, 128>}, {pipeline_mode = #tpu.pipeline_mode<synchronous>, transform_indices = @transform_3, window_bounds = array<i64: 1, 128>}, {pipeline_mode = #tpu.pipeline_mode<synchronous>, transform_indices = @transform_4, window_bounds = array<i64: 3, 128, 128>}, {pipeline_mode = #tpu.pipeline_mode<synchronous>, transform_indices = @transform_5, window_bounds = array<i64: 1, 128>}, {pipeline_mode = #tpu.pipeline_mode<synchronous>, transform_indices = @transform_6, window_bounds = array<i64: 1, 128>}, {pipeline_mode = #tpu.pipeline_mode<synchronous>, transform_indices = @transform_7, window_bounds = array<i64: 3, 128, 128>}, {pipeline_mode = #tpu.pipeline_mode<synchronous>, transform_indices = @transform_8, window_bounds = array<i64: 1, 128>}, {pipeline_mode = #tpu.pipeline_mode<synchronous>, transform_indices = @transform_9, window_bounds = array<i64: 1, 128>}, {transform_indices = @transform_10, window_bounds = array<i64: 1, 16, 128>}]} {
    %c16_i32 = arith.constant 16 : i32
    %0 = arith.muli %arg1, %c16_i32 : i32
    %c0 = arith.constant 0 : index
    %c0_0 = arith.constant 0 : index
    %c0_1 = arith.constant 0 : index
    %1 = vector.load %arg2[%c0, %c0_0, %c0_1] : memref<1x32x128xbf16, #tpu.memory_space<vmem>>, vector<1x22x128xbf16>
    %2 = vector.shape_cast %1 : vector<1x22x128xbf16> to vector<22x128xbf16>
    %c0_2 = arith.constant 0 : index
    %c0_3 = arith.constant 0 : index
    %c0_4 = arith.constant 0 : index
    %3 = vector.load %arg3[%c0_2, %c0_3, %c0_4] : memref<3x128x128xbf16, #tpu.memory_space<vmem>>, vector<1x128x128xbf16>
    %4 = vector.shape_cast %3 : vector<1x128x128xbf16> to vector<128x128xbf16>
    %cst = arith.constant dense<0.000000e+00> : vector<22x128xf32>
    %5 = tpu.matmul %2, %4, %cst {dimension_numbers = #tpu.dot_dimension_numbers<[1], [0], [0], [1], [0, 0, 1, 1], [], []>} : vector<22x128xbf16>, vector<128x128xbf16>, vector<22x128xf32> -> vector<22x128xf32>
    %c0_5 = arith.constant 0 : index
    %c1 = arith.constant 1 : index
    %c0_6 = arith.constant 0 : index
    %6 = vector.load %arg2[%c0_5, %c1, %c0_6] : memref<1x32x128xbf16, #tpu.memory_space<vmem>>, vector<1x22x128xbf16>
    %7 = vector.shape_cast %6 : vector<1x22x128xbf16> to vector<22x128xbf16>
    %c1_7 = arith.constant 1 : index
    %c0_8 = arith.constant 0 : index
    %c0_9 = arith.constant 0 : index
    %8 = vector.load %arg3[%c1_7, %c0_8, %c0_9] : memref<3x128x128xbf16, #tpu.memory_space<vmem>>, vector<1x128x128xbf16>
    %9 = vector.shape_cast %8 : vector<1x128x128xbf16> to vector<128x128xbf16>
    %cst_10 = arith.constant dense<0.000000e+00> : vector<22x128xf32>
    %10 = tpu.matmul %7, %9, %cst_10 {dimension_numbers = #tpu.dot_dimension_numbers<[1], [0], [0], [1], [0, 0, 1, 1], [], []>} : vector<22x128xbf16>, vector<128x128xbf16>, vector<22x128xf32> -> vector<22x128xf32>
    %11 = arith.addf %5, %10 : vector<22x128xf32>
    %c0_11 = arith.constant 0 : index
    %c2 = arith.constant 2 : index
    %c0_12 = arith.constant 0 : index
    %12 = vector.load %arg2[%c0_11, %c2, %c0_12] : memref<1x32x128xbf16, #tpu.memory_space<vmem>>, vector<1x22x128xbf16>
    %13 = vector.shape_cast %12 : vector<1x22x128xbf16> to vector<22x128xbf16>
    %c2_13 = arith.constant 2 : index
    %c0_14 = arith.constant 0 : index
    %c0_15 = arith.constant 0 : index
    %14 = vector.load %arg3[%c2_13, %c0_14, %c0_15] : memref<3x128x128xbf16, #tpu.memory_space<vmem>>, vector<1x128x128xbf16>
    %15 = vector.shape_cast %14 : vector<1x128x128xbf16> to vector<128x128xbf16>
    %cst_16 = arith.constant dense<0.000000e+00> : vector<22x128xf32>
    %16 = tpu.matmul %13, %15, %cst_16 {dimension_numbers = #tpu.dot_dimension_numbers<[1], [0], [0], [1], [0, 0, 1, 1], [], []>} : vector<22x128xbf16>, vector<128x128xbf16>, vector<22x128xf32> -> vector<22x128xf32>
    %17 = arith.addf %11, %16 : vector<22x128xf32>
    %c0_17 = arith.constant 0 : index
    %c0_18 = arith.constant 0 : index
    %18 = vector.load %arg4[%c0_17, %c0_18] : memref<1x128xf32, #tpu.memory_space<vmem>>, vector<1x128xf32>
    %19 = vector.broadcast %18 : vector<1x128xf32> to vector<22x128xf32>
    %20 = arith.mulf %17, %19 : vector<22x128xf32>
    %c0_19 = arith.constant 0 : index
    %c0_20 = arith.constant 0 : index
    %21 = vector.load %arg5[%c0_19, %c0_20] : memref<1x128xf32, #tpu.memory_space<vmem>>, vector<1x128xf32>
    %22 = vector.broadcast %21 : vector<1x128xf32> to vector<22x128xf32>
    %23 = arith.addf %20, %22 : vector<22x128xf32>
    %cst_21 = arith.constant 0.000000e+00 : f32
    %24 = vector.broadcast %cst_21 : f32 to vector<22x128xf32>
    %25 = arith.maximumf %23, %24 : vector<22x128xf32>
    %c3_i32 = arith.constant 3 : i32
    %26 = arith.subi %0, %c3_i32 : i32
    %27 = tpu.iota {dimensions = array<i32: 0>} : vector<22x1xi32>
    %28 = vector.broadcast %26 : i32 to vector<22x1xi32>
    %29 = arith.addi %28, %27 : vector<22x1xi32>
    %c0_i32 = arith.constant 0 : i32
    %30 = vector.broadcast %c0_i32 : i32 to vector<22x1xi32>
    %31 = arith.cmpi sge, %29, %30 : vector<22x1xi32>
    %c40_i32 = arith.constant 40 : i32
    %32 = vector.broadcast %c40_i32 : i32 to vector<22x1xi32>
    %33 = arith.cmpi slt, %29, %32 : vector<22x1xi32>
    %34 = arith.andi %31, %33 : vector<22x1xi1>
    %cst_22 = arith.constant 0.000000e+00 : f32
    %35 = vector.shape_cast %34 : vector<22x1xi1> to vector<22x1xi1>
    %36 = vector.broadcast %35 : vector<22x1xi1> to vector<22x128xi1>
    %37 = vector.broadcast %cst_22 : f32 to vector<22x128xf32>
    %38 = arith.select %36, %25, %37 : vector<22x128xi1>, vector<22x128xf32>
    %39 = arith.truncf %38 : vector<22x128xf32> to vector<22x128xbf16>
    %40 = vector.extract_strided_slice %39 {offsets = [0, 0], sizes = [18, 128], strides = [1, 1]} : vector<22x128xbf16> to vector<18x128xbf16>
    %c0_23 = arith.constant 0 : index
    %c0_24 = arith.constant 0 : index
    %c0_25 = arith.constant 0 : index
    %41 = vector.load %arg6[%c0_23, %c0_24, %c0_25] : memref<3x128x128xbf16, #tpu.memory_space<vmem>>, vector<1x128x128xbf16>
    %42 = vector.shape_cast %41 : vector<1x128x128xbf16> to vector<128x128xbf16>
    %cst_26 = arith.constant dense<0.000000e+00> : vector<18x128xf32>
    %43 = tpu.matmul %40, %42, %cst_26 {dimension_numbers = #tpu.dot_dimension_numbers<[1], [0], [0], [1], [0, 0, 1, 1], [], []>} : vector<18x128xbf16>, vector<128x128xbf16>, vector<18x128xf32> -> vector<18x128xf32>
    %44 = vector.extract_strided_slice %39 {offsets = [2, 0], sizes = [18, 128], strides = [1, 1]} : vector<22x128xbf16> to vector<18x128xbf16>
    %c1_27 = arith.constant 1 : index
    %c0_28 = arith.constant 0 : index
    %c0_29 = arith.constant 0 : index
    %45 = vector.load %arg6[%c1_27, %c0_28, %c0_29] : memref<3x128x128xbf16, #tpu.memory_space<vmem>>, vector<1x128x128xbf16>
    %46 = vector.shape_cast %45 : vector<1x128x128xbf16> to vector<128x128xbf16>
    %cst_30 = arith.constant dense<0.000000e+00> : vector<18x128xf32>
    %47 = tpu.matmul %44, %46, %cst_30 {dimension_numbers = #tpu.dot_dimension_numbers<[1], [0], [0], [1], [0, 0, 1, 1], [], []>} : vector<18x128xbf16>, vector<128x128xbf16>, vector<18x128xf32> -> vector<18x128xf32>
    %48 = arith.addf %43, %47 : vector<18x128xf32>
    %49 = vector.extract_strided_slice %39 {offsets = [4, 0], sizes = [18, 128], strides = [1, 1]} : vector<22x128xbf16> to vector<18x128xbf16>
    %c2_31 = arith.constant 2 : index
    %c0_32 = arith.constant 0 : index
    %c0_33 = arith.constant 0 : index
    %50 = vector.load %arg6[%c2_31, %c0_32, %c0_33] : memref<3x128x128xbf16, #tpu.memory_space<vmem>>, vector<1x128x128xbf16>
    %51 = vector.shape_cast %50 : vector<1x128x128xbf16> to vector<128x128xbf16>
    %cst_34 = arith.constant dense<0.000000e+00> : vector<18x128xf32>
    %52 = tpu.matmul %49, %51, %cst_34 {dimension_numbers = #tpu.dot_dimension_numbers<[1], [0], [0], [1], [0, 0, 1, 1], [], []>} : vector<18x128xbf16>, vector<128x128xbf16>, vector<18x128xf32> -> vector<18x128xf32>
    %53 = arith.addf %48, %52 : vector<18x128xf32>
    %c0_35 = arith.constant 0 : index
    %c0_36 = arith.constant 0 : index
    %54 = vector.load %arg7[%c0_35, %c0_36] : memref<1x128xf32, #tpu.memory_space<vmem>>, vector<1x128xf32>
    %55 = vector.broadcast %54 : vector<1x128xf32> to vector<18x128xf32>
    %56 = arith.mulf %53, %55 : vector<18x128xf32>
    %c0_37 = arith.constant 0 : index
    %c0_38 = arith.constant 0 : index
    %57 = vector.load %arg8[%c0_37, %c0_38] : memref<1x128xf32, #tpu.memory_space<vmem>>, vector<1x128xf32>
    %58 = vector.broadcast %57 : vector<1x128xf32> to vector<18x128xf32>
    %59 = arith.addf %56, %58 : vector<18x128xf32>
    %cst_39 = arith.constant 0.000000e+00 : f32
    %60 = vector.broadcast %cst_39 : f32 to vector<18x128xf32>
    %61 = arith.maximumf %59, %60 : vector<18x128xf32>
    %c1_i32 = arith.constant 1 : i32
    %62 = arith.subi %0, %c1_i32 : i32
    %63 = tpu.iota {dimensions = array<i32: 0>} : vector<18x1xi32>
    %64 = vector.broadcast %62 : i32 to vector<18x1xi32>
    %65 = arith.addi %64, %63 : vector<18x1xi32>
    %c0_i32_40 = arith.constant 0 : i32
    %66 = vector.broadcast %c0_i32_40 : i32 to vector<18x1xi32>
    %67 = arith.cmpi sge, %65, %66 : vector<18x1xi32>
    %c40_i32_41 = arith.constant 40 : i32
    %68 = vector.broadcast %c40_i32_41 : i32 to vector<18x1xi32>
    %69 = arith.cmpi slt, %65, %68 : vector<18x1xi32>
    %70 = arith.andi %67, %69 : vector<18x1xi1>
    %cst_42 = arith.constant 0.000000e+00 : f32
    %71 = vector.shape_cast %70 : vector<18x1xi1> to vector<18x1xi1>
    %72 = vector.broadcast %71 : vector<18x1xi1> to vector<18x128xi1>
    %73 = vector.broadcast %cst_42 : f32 to vector<18x128xf32>
    %74 = arith.select %72, %61, %73 : vector<18x128xi1>, vector<18x128xf32>
    %75 = arith.truncf %74 : vector<18x128xf32> to vector<18x128xbf16>
    %76 = vector.extract_strided_slice %75 {offsets = [0, 0], sizes = [16, 128], strides = [1, 1]} : vector<18x128xbf16> to vector<16x128xbf16>
    %c0_43 = arith.constant 0 : index
    %c0_44 = arith.constant 0 : index
    %c0_45 = arith.constant 0 : index
    %77 = vector.load %arg9[%c0_43, %c0_44, %c0_45] : memref<3x128x128xbf16, #tpu.memory_space<vmem>>, vector<1x128x128xbf16>
    %78 = vector.shape_cast %77 : vector<1x128x128xbf16> to vector<128x128xbf16>
    %cst_46 = arith.constant dense<0.000000e+00> : vector<16x128xf32>
    %79 = tpu.matmul %76, %78, %cst_46 {dimension_numbers = #tpu.dot_dimension_numbers<[1], [0], [0], [1], [0, 0, 1, 1], [], []>} : vector<16x128xbf16>, vector<128x128xbf16>, vector<16x128xf32> -> vector<16x128xf32>
    %80 = vector.extract_strided_slice %75 {offsets = [1, 0], sizes = [16, 128], strides = [1, 1]} : vector<18x128xbf16> to vector<16x128xbf16>
    %c1_47 = arith.constant 1 : index
    %c0_48 = arith.constant 0 : index
    %c0_49 = arith.constant 0 : index
    %81 = vector.load %arg9[%c1_47, %c0_48, %c0_49] : memref<3x128x128xbf16, #tpu.memory_space<vmem>>, vector<1x128x128xbf16>
    %82 = vector.shape_cast %81 : vector<1x128x128xbf16> to vector<128x128xbf16>
    %cst_50 = arith.constant dense<0.000000e+00> : vector<16x128xf32>
    %83 = tpu.matmul %80, %82, %cst_50 {dimension_numbers = #tpu.dot_dimension_numbers<[1], [0], [0], [1], [0, 0, 1, 1], [], []>} : vector<16x128xbf16>, vector<128x128xbf16>, vector<16x128xf32> -> vector<16x128xf32>
    %84 = arith.addf %79, %83 : vector<16x128xf32>
    %85 = vector.extract_strided_slice %75 {offsets = [2, 0], sizes = [16, 128], strides = [1, 1]} : vector<18x128xbf16> to vector<16x128xbf16>
    %c2_51 = arith.constant 2 : index
    %c0_52 = arith.constant 0 : index
    %c0_53 = arith.constant 0 : index
    %86 = vector.load %arg9[%c2_51, %c0_52, %c0_53] : memref<3x128x128xbf16, #tpu.memory_space<vmem>>, vector<1x128x128xbf16>
    %87 = vector.shape_cast %86 : vector<1x128x128xbf16> to vector<128x128xbf16>
    %cst_54 = arith.constant dense<0.000000e+00> : vector<16x128xf32>
    %88 = tpu.matmul %85, %87, %cst_54 {dimension_numbers = #tpu.dot_dimension_numbers<[1], [0], [0], [1], [0, 0, 1, 1], [], []>} : vector<16x128xbf16>, vector<128x128xbf16>, vector<16x128xf32> -> vector<16x128xf32>
    %89 = arith.addf %84, %88 : vector<16x128xf32>
    %c0_55 = arith.constant 0 : index
    %c0_56 = arith.constant 0 : index
    %90 = vector.load %arg10[%c0_55, %c0_56] : memref<1x128xf32, #tpu.memory_space<vmem>>, vector<1x128xf32>
    %91 = vector.broadcast %90 : vector<1x128xf32> to vector<16x128xf32>
    %92 = arith.mulf %89, %91 : vector<16x128xf32>
    %c0_57 = arith.constant 0 : index
    %c0_58 = arith.constant 0 : index
    %93 = vector.load %arg11[%c0_57, %c0_58] : memref<1x128xf32, #tpu.memory_space<vmem>>, vector<1x128xf32>
    %94 = vector.broadcast %93 : vector<1x128xf32> to vector<16x128xf32>
    %95 = arith.addf %92, %94 : vector<16x128xf32>
    %cst_59 = arith.constant 0.000000e+00 : f32
    %96 = vector.broadcast %cst_59 : f32 to vector<16x128xf32>
    %97 = arith.maximumf %95, %96 : vector<16x128xf32>
    %c0_60 = arith.constant 0 : index
    %c0_61 = arith.constant 0 : index
    %c0_62 = arith.constant 0 : index
    %98 = vector.load %arg12[%c0_60, %c0_61, %c0_62] : memref<1x16x128xf32, #tpu.memory_space<vmem>>, vector<1x16x128xf32>
    %99 = vector.shape_cast %98 : vector<1x16x128xf32> to vector<16x128xf32>
    %100 = vector.shape_cast %97 : vector<16x128xf32> to vector<1x16x128xf32>
    tpu.vector_store %arg12[%c0_60, %c0_61, %c0_62], %100 {strides = array<i32>} : memref<1x16x128xf32, #tpu.memory_space<vmem>>, vector<1x16x128xf32>,
    return
  }
  func.func @transform_0(%arg0: i32, %arg1: i32) -> (i32, i32, i32) {
    %c3_i32 = arith.constant 3 : i32
    %0 = arith.muli %arg0, %c3_i32 : i32
    %1 = arith.addi %0, %arg1 : i32
    %c0_i32 = arith.constant 0 : i32
    %c0_i32_0 = arith.constant 0 : i32
    %c0_i32_1 = arith.constant 0 : i32
    return %1, %c0_i32, %c0_i32_0 : i32, i32, i32
  }
  func.func @transform_1(%arg0: i32, %arg1: i32) -> (i32, i32, i32) {
    %c0_i32 = arith.constant 0 : i32
    %c0_i32_0 = arith.constant 0 : i32
    %c0_i32_1 = arith.constant 0 : i32
    %c0_i32_2 = arith.constant 0 : i32
    return %c0_i32, %c0_i32_0, %c0_i32_1 : i32, i32, i32
  }
  func.func @transform_2(%arg0: i32, %arg1: i32) -> (i32, i32) {
    %c0_i32 = arith.constant 0 : i32
    %c0_i32_0 = arith.constant 0 : i32
    %c0_i32_1 = arith.constant 0 : i32
    return %c0_i32, %c0_i32_0 : i32, i32
  }
  func.func @transform_3(%arg0: i32, %arg1: i32) -> (i32, i32) {
    %c0_i32 = arith.constant 0 : i32
    %c0_i32_0 = arith.constant 0 : i32
    %c0_i32_1 = arith.constant 0 : i32
    return %c0_i32, %c0_i32_0 : i32, i32
  }
  func.func @transform_4(%arg0: i32, %arg1: i32) -> (i32, i32, i32) {
    %c0_i32 = arith.constant 0 : i32
    %c0_i32_0 = arith.constant 0 : i32
    %c0_i32_1 = arith.constant 0 : i32
    %c0_i32_2 = arith.constant 0 : i32
    return %c0_i32, %c0_i32_0, %c0_i32_1 : i32, i32, i32
  }
  func.func @transform_5(%arg0: i32, %arg1: i32) -> (i32, i32) {
    %c0_i32 = arith.constant 0 : i32
    %c0_i32_0 = arith.constant 0 : i32
    %c0_i32_1 = arith.constant 0 : i32
    return %c0_i32, %c0_i32_0 : i32, i32
  }
  func.func @transform_6(%arg0: i32, %arg1: i32) -> (i32, i32) {
    %c0_i32 = arith.constant 0 : i32
    %c0_i32_0 = arith.constant 0 : i32
    %c0_i32_1 = arith.constant 0 : i32
    return %c0_i32, %c0_i32_0 : i32, i32
  }
  func.func @transform_7(%arg0: i32, %arg1: i32) -> (i32, i32, i32) {
    %c0_i32 = arith.constant 0 : i32
    %c0_i32_0 = arith.constant 0 : i32
    %c0_i32_1 = arith.constant 0 : i32
    %c0_i32_2 = arith.constant 0 : i32
    return %c0_i32, %c0_i32_0, %c0_i32_1 : i32, i32, i32
  }
  func.func @transform_8(%arg0: i32, %arg1: i32) -> (i32, i32) {
    %c0_i32 = arith.constant 0 : i32
    %c0_i32_0 = arith.constant 0 : i32
    %c0_i32_1 = arith.constant 0 : i32
    return %c0_i32, %c0_i32_0 : i32, i32
  }
  func.func @transform_9(%arg0: i32, %arg1: i32) -> (i32, i32) {
    %c0_i32 = arith.constant 0 : i32
    %c0_i32_0 = arith.constant 0 : i32
    %c0_i32_1 = arith.constant 0 : i32
    return %c0_i32, %c0_i32_0 : i32, i32
  }
  func.func @transform_10(%arg0: i32, %arg1: i32) -> (i32, i32, i32) {
    %c0_i32 = arith.constant 0 : i32
    %c0_i32_0 = arith.constant 0 : i32
    return %arg0, %arg1, %c0_i32 : i32, i32, i32
  }
}

</mosaic_0001>

<bundles_post_ra>
// kernel: tpu_custom_call.1
= control target key start
LH: loop header
LB: loop body
LE: loop exit
PB: predicated region body
PF: predicated region fallthrough
CT: control target
= control target key end

     0   :  { %s3041_s0 = inlined_call_operand.hbm [shape: bf16[6,32,128], index: 0, kind: input, shape index: {}]   ;;  %s3042_s1 = inlined_call_operand.hbm [shape: bf16[3,128,128], index: 1, kind: input, shape index: {}]   ;;  %s3043_s2 = inlined_call_operand.vmem [shape: f32[1,128], index: 2, kind: input, shape index: {}]   ;;  %s3044_s3 = inlined_call_operand.vmem [shape: f32[1,128], index: 3, kind: input, shape index: {}]   ;;  %s3045_s4 = inlined_call_operand.hbm [shape: bf16[3,128,128], index: 4, kind: input, shape index: {}]   ;;  %s3046_s5 = inlined_call_operand.vmem [shape: f32[1,128], index: 5, kind: input, shape index: {}]   ;;  %s3047_s6 = inlined_call_operand.vmem [shape: f32[1,128], index: 6, kind: input, shape index: {}]   ;;  %s3048_s7 = inlined_call_operand.hbm [shape: bf16[3,128,128], index: 7, kind: input, shape index: {}]   ;;  %s3049_s8 = inlined_call_operand.vmem [shape: f32[1,128], index: 8, kind: input, shape index: {}]   ;;  %s3050_s9 = inlined_call_operand.vmem [shape: f32[1,128], index: 9, kind: input, shape index: {}]   ;;  %s3051_s10 = inlined_call_operand.hbm [shape: f32[2,48,128], index: 10, kind: output, shape index: {}]  }
   0x1   :  { %3063 = sst [smem:[#allocation22_spill]] %s3042_s1 }
   0x2   :  { %3064 = sst [smem:[#allocation23_spill]] %s3043_s2 }
   0x3   :  { %3065 = sst [smem:[#allocation24_spill]] %s3044_s3 }
   0x4   :  { %3066 = sst [smem:[#allocation25_spill]] %s3045_s4 }
   0x5   :  { %3067 = sst [smem:[#allocation26_spill]] %s3046_s5 }
   0x6   :  { %3068 = sst [smem:[#allocation27_spill]] %s3047_s6 }
   0x7   :  { %3069 = sst [smem:[#allocation28_spill]] %s3048_s7 }
   0x8   :  { %3070 = sst [smem:[#allocation29_spill]] %s3049_s8 }
   0x9   :  { %3071 = sst [smem:[#allocation30_spill]] %s3050_s9 }
   0xa   :  { %3072 = sst [smem:[#allocation31_spill]] %s3051_s10 }
   0xb   :  { %15 = vsyncpa [#allocation3], 0 }
   0xc   :  { %17 = vsyncpa [#allocation3 + $0x1], 0 }
   0xd   :  { %18 = vsyncpa [#allocation6], 0 }
   0xe   :  { %19 = vsyncpa [#allocation9], 0 }
   0xf   :  { %20 = vsyncpa [#allocation4], 0 }
  0x10   :  { %22 = vsyncpa [#allocation4 + $0x1], 0  ;;  %s2682_s13 = smov 0   ;;  %s2684_s14 = smov 0  }
  0x11   :  { %s2686_s15 = smov 0   ;;  %s2688_s16 = smov 0  }
  0x12   :  { %s2690_s17 = smov 0   ;;  %s2692_s18 = smov 0  }
  0x13   :  { %s2694_s19 = smov 0   ;;  %s2696_s20 = smov 0  }
  0x14   :  { %s2698_s21 = smov 0   ;;  %s2700_s22 = smov 0  }
  0x15   :  { %s2702_s23 = smov 0  }
  0x16 LB: > { %3073 = sst [smem:[#allocation15_spill]] %s2574_s13  ;;  %s1781_s24 = sadd.s32 4294967295, %s2614_s23   ;;  %s2614_s23 = sphi %s2702_s23, %s28_s23   ;;  %s2610_s22 = sphi %s2700_s22, %s3120_s22   ;;  %s2606_s21 = sphi %s2698_s21, %s3119_s21   ;;  %s2602_s20 = sphi %s2696_s20, %s3118_s20   ;;  %s2598_s19 = sphi %s2694_s19, %s3111_s19   ;;  %s2594_s18 = sphi %s2692_s18, %s3117_s18   ;;  %s2590_s17 = sphi %s2690_s17, %s3116_s17   ;;  %s2586_s16 = sphi %s2688_s16, %s3115_s16   ;;  %s2582_s15 = sphi %s2686_s15, %s3114_s15   ;;  %s2578_s14 = sphi %s2684_s14, %s3113_s14   ;;  %s2574_s13 = sphi %s2682_s13, %s3110_s13  }
  0x17   : > { %3074 = sst [smem:[#allocation16_spill]] %s2578_s14  ;;  %s1782_s25 = sadd.s32 4294967294, %s2614_s23  }
  0x18   : > { %3075 = sst [smem:[#allocation17_spill]] %s2598_s19  ;;  %p64_p0 = scmp.ne.s32.totalorder %s2590_s17, %s2586_s16 }
  0x19   : > { %3076 = sst [smem:[#allocation18_spill]] %s2602_s20  ;;  %p2738_p1 = scmp.eq.s32.totalorder %s1781_s24, 0 }
  0x1a   : > { %3077 = sst [smem:[#allocation19_spill]] %s2606_s21  ;;  %p278_p2 = scmp.ne.s32.totalorder %s2582_s15, %s2578_s14 }
  0x1b   : > { %p279_p3 = scmp.eq.s32.totalorder %s1781_s24, 5  ;;  %p2746_p4 = por %p2738_p1, %p64_p0 }
  0x1c   : > { %p284_p5 = scmp.ne.s32.totalorder %s2578_s14, %s2574_s13  ;;  %p285_p7 = scmp.eq.s32.totalorder %s1782_s25, 5 }
  0x1d   : > { %p2752_p6 = por %p279_p3, %p278_p2  ;;  %p1783_p8 = scmp.ge.s32.totalorder %s2614_s23, 1 }
  0x1e   : > { %p292_p9 = scmp.lt.s32.totalorder %s2614_s23, 7  ;;  %p2758_p10 = por %p285_p7, %p284_p5 }
  0x1f   : > { %s3080_s28 = scalar_select %p2752_p6, 1, 0 }
  0x20   : > { %s3082_s29 = scalar_select %p2758_p10, 1, 0 }
  0x21   : > { %3081 = sst [smem:[#allocation20_spill]] %s3080_s28  ;;  %p2762_p11 = pnand %p1783_p8, %p292_p9 }
  0x22   : > { %3083 = sst [smem:[#allocation21_spill]] %s3082_s29  ;;  %s2616_s11 = smov [#allocation5]  }
  0x23   : > { %s304_s12 = sshll.u32 %s2616_s11, 4  ;;  %p2181_p12 = pneg %p2762_p11  ;;  %s305_s12 = int_to_ptr.vmem [resolvable:$true] %s304_s12 }
  0x24   : > { %s2617_s24 = smov [#allocation7]   ;;  %s2391_s29 = scalar_lea.vmem %s305_s12, 3072 }
  0x25   : > { %p2770_p13 = pnand %p2181_p12, %p2738_p1  ;;  %s323_s25 = sshll.u32 %s2617_s24, 4  ;;  %s324_s25 = int_to_ptr.vmem [resolvable:$true] %s323_s25 }
  0x26   : > { %p2392_p2 = scmp.ne.s32.totalorder %s305_s12, %s2391_s29  ;;  %p2399_p7 = scmp.lt.s32.totalorder %s305_s12, %s305_s12 }
  0x27   : > { %p2382_p0 = pneg %p2770_p13  ;;  %p2400_p8 = scmp.lt.s32.totalorder %s2391_s29, %s2391_s29 }
  0x29   : > { %p2394_p3 = pnand %p2392_p2, %p2382_p0  ;;  %p2401_p9 = por %p2400_p8, %p2399_p7 }
  0x2b   : > { %p2395_p5 = pneg %p2394_p3 }
  0x2d   : > { %p2402_p12 = pnand %p2401_p9, %p2395_p5 }
  0x2f   : > { %2405 = shalt.err (!%p2402_p12)
}
  0x30   : > { %s3057_s11 = smov 64   ;;  %s3058_s13 = smov 4  }
  0x31   : > { %s3086_s1 = sld [smem:[#allocation22_spill]]  ;;  %s2417_s28 = scalar_lea.vmem %s324_s25, 3072 }
  0x32   : > { %p2418_p2 = scmp.ne.s32.totalorder %s324_s25, %s2417_s28  ;;  %p2425_p5 = scmp.lt.s32.totalorder %s324_s25, %s324_s25 }
  0x33   : > { %p2426_p8 = scmp.lt.s32.totalorder %s2417_s28, %s2417_s28 }
  0x34   : > { %p2420_p3 = pnand %p2418_p2, %p2382_p0 }
  0x35   : > { %p2427_p9 = por %p2426_p8, %p2425_p5 }
  0x36   : > { %p2421_p7 = pneg %p2420_p3 }
  0x37   : > { %2184 = dma.hbm_to_vmem [thread:$0]  (!%p2770_p13), %s3086_s1, 3072, %s305_s12, [#allocation6], %s3057_s11, %s3057_s11, %s3058_s13  }
  0x38   : > { %p2428_p12 = pnand %p2427_p9, %p2421_p7 }
  0x3a   : > { %2431 = shalt.err (!%p2428_p12)
}
  0x3b   : > { %s3087_s4 = sld [smem:[#allocation25_spill]]  ;;  %s2620_s10 = smov [#allocation8]  }
  0x3c   : > { %s342_s12 = sshll.u32 %s2620_s10, 4  ;;  %s343_s12 = int_to_ptr.vmem [resolvable:$true] %s342_s12 }
  0x3d   : > { %s2443_s24 = scalar_lea.vmem %s343_s12, 3072  ;;  %p2451_p5 = scmp.lt.s32.totalorder %s343_s12, %s343_s12 }
  0x3e   : > { %p2444_p2 = scmp.ne.s32.totalorder %s343_s12, %s2443_s24  ;;  %p2452_p8 = scmp.lt.s32.totalorder %s2443_s24, %s2443_s24 }
  0x40   : > { %p2446_p3 = pnand %p2444_p2, %p2382_p0  ;;  %p2453_p9 = por %p2452_p8, %p2451_p5 }
  0x41   : > { %2187 = dma.hbm_to_vmem [thread:$0]  (!%p2770_p13), %s3087_s4, 3072, %s324_s25, [#allocation6], %s3057_s11, %s3057_s11, %s3058_s13  }
  0x42   : > { %p2447_p7 = pneg %p2446_p3 }
  0x44   : > { %p2454_p12 = pnand %p2453_p9, %p2447_p7 }
  0x46   : > { %2457 = shalt.err (!%p2454_p12)
}
  0x47   : > { %s3088_s7 = sld [smem:[#allocation28_spill]]  ;;  %s37_s16 = sadd.s32 1, %s2606_s21 }
  0x48   : > { %p38_p0 = scmp.ge.s32.totalorder %s37_s16, 3  ;;  %s40_s25 = sadd.s32 1, %s2610_s22 }
  0x49   : > { %s44_s29 = smul.u32 3, %s2610_s22  ;;  %p58_p2 = scmp.ne.s32.totalorder %s2594_s18, %s2590_s17 }
  0x4a   : > { %s3122_s16 = smov (%p38_p0, %s37_s16), 0  ;;  %s3124_s25 = smov (!%p38_p0, %s40_s25), %s2610_s22 }
  0x4b   : > { %s51_s10 = sadd.s32 1, %s2594_s18  ;;  %p59_p3 = scmp.eq.s32.totalorder %s2614_s23, 0 }
  0x4c   : > { %p42_p7 = scmp.ge.s32.totalorder %s3124_s25, 2  ;;  %s45_s24 = sadd.s32 %s2606_s21, %s44_s29 }
  0x4d   : > { %2190 = dma.hbm_to_vmem [thread:$0]  (!%p2770_p13), %s3088_s7, 3072, %s343_s12, [#allocation9], %s3057_s11, %s3057_s11, %s3058_s13  }
  0x4e   : > { %p2820_p13 = por %p59_p3, %p58_p2  ;;  %s264_s9 = ssub.s32 %s2606_s21, %s3122_s16 }
  0x4f   : > { %s3126_s25 = smov (%p42_p7, %s3124_s25), 0  ;;  %s268_s28 = sadd.s32 1, %s2582_s15 }
  0x50   : > { %s362_s11 = sand.u32 1, %s2594_s18   ;;  %s46_s13 = smul.u32 3, %s3126_s25 }
  0x51   : > { %s263_s1 = ssub.s32 %s2610_s22, %s3126_s25  ;;  %p2202_p5 = scmp.lt.s32.totalorder %s2614_s23, 6 }
  0x52   : > { %s265_s4 = sor.u32 %s264_s9, %s263_s1  ;;  %s47_s7 = sadd.s32 %s46_s13, %s3122_s16 }
  0x53   : > { %p266_p8 = scmp.eq.s32.totalorder %s265_s4, 0  ;;  %s48_s29 = ssub.s32 %s45_s24, %s47_s7 }
  0x54   : > { %s1788_s8 = sshll.u32 %s362_s11, 4  ;;  %p49_p9 = scmp.eq.s32.totalorder %s48_s29, 0 }
  0x55   : > { %s2836_s20 = scalar_select %p266_p8, %s2582_s15, %s268_s28  }
  0x56   : > { %s2839_s21 = scalar_select %p49_p9, %s2594_s18, %s51_s10  }
  0x57   : > { %s1896_s14 = sshll.u32 %s45_s24, 8  ;;  %s366_s6 = scalar_lea.vmem [#allocation2], %s1788_s8 }
  0x58   : > { %s375_s5 = sshll.u32 %s366_s6, 4  ;;  %s374_s19 = scalar_lea.hbm %s3041_s0, %s1896_s14  ;;  %s376_s5 = int_to_ptr.vmem [resolvable:$true] %s375_s5 }
  0x59   : > { %p2848_p12 = pnand %p2202_p5, %p2820_p13  ;;  %s363_s4 = scalar_lea.sflag [#allocation3], %s362_s11 }
  0x5a   : > { %s2471_s7 = scalar_lea.vmem %s376_s5, 256  ;;  %s2621_s6 = smov [#allocation2]  }
  0x5b   : > { %p2460_p0 = pneg %p2848_p12  ;;  %p2472_p2 = scmp.ne.s32.totalorder %s376_s5, %s2471_s7 }
  0x5c   : > { %s2476_s8 = sshll.u32 %s2621_s6, 4  ;;  %s2477_s8 = int_to_ptr.vmem [resolvable:$false] %s2476_s8 }
  0x5d   : > { %p2474_p3 = pnand %p2472_p2, %p2460_p0  ;;  %s2478_s2 = scalar_lea.vmem %s2477_s8, 512 }
  0x5e   : > { %p2479_p8 = scmp.lt.s32.totalorder %s376_s5, %s2477_s8  ;;  %p2480_p9 = scmp.lt.s32.totalorder %s2478_s2, %s2471_s7 }
  0x5f   : > { %p2475_p7 = pneg %p2474_p3 }
  0x60   : > { %p2481_p10 = por %p2480_p9, %p2479_p8 }
  0x62   : > { %p2482_p6 = pnand %p2481_p10, %p2475_p7 }
  0x64   : > { %2485 = shalt.err (!%p2482_p6)
}
  0x65   : > { %s3091_s3 = smov 4   ;;  %s3092_s13 = smov 64  }
  0x66   : > { %2194 = dma.hbm_to_vmem [thread:$0]  (!%p2848_p12), %s374_s19, 256, %s376_s5, %s363_s4, %s3092_s13, %s3092_s13, %s3091_s3  }
  0x67   : > { %387 = sbr.rel (%p2762_p11) target bundleno = 892 (0x37c), region = 60  ;;  %s389_s14 = sand.u32 (!%p2762_p11), 1, %s2590_s17  }
  0x68   : > { %s1792_s11 = sshll.u32 (!%p2762_p11), %s389_s14, 4  ;;  %s390_s10 = scalar_lea.sflag (!%p2762_p11), [#allocation3], %s389_s14 }
  0x69   : > { %s2862_s24 = scalar_lea.vmem (!%p2762_p11), [#allocation2], %s1792_s11 }
  0x6c   : > { %2557 = dma.done.wait (%p2746_p4), %s390_s10, 256  }
  0x6d   : > { %2559 = vsyncadd (%p2746_p4), %s390_s10, 4294967040 }
  0x6e   : > { %2561 = dma.done.wait (%p2738_p1), [#allocation6], 6144  }
  0x6f   : > { %2563 = vsyncadd (%p2738_p1), [#allocation6], 4294961152 }
  0x70   : > { %2565 = dma.done.wait (%p2738_p1), [#allocation9], 3072  }
  0x71   : > { %2567 = vsyncadd (%p2738_p1), [#allocation9], 4294964224  ;;  %v2304_v0 = vld [vmem:[#allocation5 + $0x78] sm:$0xff]   ;;  %v2306_v2 = vld [vmem:[#allocation5 + $0x70] sm:$0xff]   ;;  %vm492_vm0 = vsmask.f32 7424 }
  0x72   : > { %v2305_v1 = vld [vmem:[#allocation5 + $0x38] sm:$0xff]   ;;  %1984 = vmatprep.subr.bf16.mxu0 %v2304_v0  ;;  %v2307_v3 = vld [vmem:[#allocation5 + $0x30] sm:$0xff]   ;;  %v2308_v4 = vld [vmem:[#allocation5 + $0x68] sm:$0xff]   ;;  %vm728_vm1 = vcmask 1046528   ;;  %s3093_s5 = sld [smem:[#allocation17_spill]]  ;;  %vm1134_vm13 = vcmask 1045504  }
  0x73   : > { %2004 = vmatprep.subr.bf16.mxu1 %v2305_v1  ;;  %1985 = vmatpush3.bf16.msra.mxu0 %v2304_v0  ;;  %v2309_v5 = vld [vmem:[#allocation5 + $0x28] sm:$0xff]   ;;  %v2310_v6 = vld [vmem:[#allocation5 + $0x60] sm:$0xff]   ;;  %v2312_v8 = vld [vmem:[#allocation5 + $0x58] sm:$0xff]   ;;  %s3094_s12 = sld [smem:[#allocation23_spill]]  ;;  %vm2623_vm14 = vmmov 0   ;;  %s2624_s10 = smov [#allocation10]  }
  0x74   : > { %2005 = vmatpush3.bf16.msra.mxu1 %v2305_v1  ;;  %1986 = vmatprep.subr.bf16.mxu0 %v2306_v2  ;;  %v2311_v7 = vld [vmem:[#allocation5 + $0x20] sm:$0xff]   ;;  %v2313_v9 = vld [vmem:[#allocation5 + $0x18] sm:$0xff]   ;;  %v2314_v10 = vld [vmem:[#allocation5 + $0x50] sm:$0xff]   ;;  %s3095_s29 = sld [smem:[#allocation24_spill]] }
  0x75   : > { %2006 = vmatprep.subr.bf16.mxu1 %v2307_v3  ;;  %v2315_v11 = vld [vmem:[#allocation5 + $0x10] sm:$0xff]   ;;  %v2879_v15 = vld [vmem:[%s2862_s24 + $0x8] ss:$0 sps:$4 sm:$0xff]   ;;  %v2318_v24 = vld [vmem:[#allocation5 + $0x40] sm:$0xff]   ;;  %s3098_s6 = sld [smem:[#allocation26_spill]] }
  0x76   : > { %v447_v12 = vld [vmem:[%s2862_s24] sm:$0xf]  ;;  %v448_v13 = vld [vmem:[%s2862_s24 + $0x4] sm:$0xf]  ;;  %v501_v18 = vshll.u32 %v2879_v15, 16  ;;  %v2316_v19 = vld [vmem:[#allocation5 + $0x48] sm:$0xff]  }
  0x77   : > { %1987 = vmatpush3.bf16.msra.mxu0 %v2306_v2  ;;  %v1798_v14 = vcombine.low %v447_v12, %v448_v13  ;;  %v2317_v20 = vld [vmem:[#allocation5 + $0x8] sm:$0xff]   ;;  %v2319_v25 = vld [vmem:[#allocation5] sm:$0xff]   ;;  %v505_v27 = vshrl.u32 %v2879_v15, 16  ;;  %v2323_v28 = vld [vmem:[#allocation5 + $0xb8] sm:$0xff]   ;;  %v730_v33 = vrot.slane %v2879_v15, 1  ;;  %v857_v2 = vlaneseq  ;;  %s3099_s3 = sld [smem:[#allocation27_spill]] }
  0x78   : > { %2007 = vmatpush3.bf16.msra.mxu1 %v2307_v3  ;;  %1988 = vmatprep.subr.bf16.mxu0 %v2308_v4  ;;  %v503_v22 = vrot.slane %v501_v18, 1  ;;  %v707_v29 = vld [vmem:[%s2862_s24] sm:$0xe]  ;;  %v2322_v31 = vld [vmem:[%s2862_s24 + $0x8] ss:$0 sps:$4 sm:$0x77]  }
  0x79   : > { %2008 = vmatprep.subr.bf16.mxu1 %v2309_v5  ;;  %v494_v16 = vshrl.u32 %v1798_v14, 16  ;;  %v496_v17 = vshll.u32 %v1798_v14, 16  ;;  %2020 = vmatprep.mubr.bf16.mxu1 %v1798_v14  ;;  %v1817_v30 = vcombine.low %v707_v29, %v448_v13  ;;  %v2324_v35 = vld [vmem:[#allocation5 + $0xb0] sm:$0xff]   ;;  %v2325_v37 = vld [vmem:[#allocation5 + $0xa8] sm:$0xff]   ;;  %v2326_v38 = vld [vmem:[#allocation5 + $0xa0] sm:$0xff]   ;;  %s1797_s19 = sshll.u32 %s3093_s5, 4 }
  0x7a   : > { %v507_v34 = vor.u32 %v505_v27, %v503_v22  ;;  %v2327_v39 = vld [vmem:[#allocation5 + $0x98] sm:$0xff]   ;;  %v2328_v40 = vld [vmem:[#allocation5 + $0x90] sm:$0xff]   ;;  %v2329_v41 = vld [vmem:[#allocation5 + $0x88] sm:$0xff]   ;;  %v2892_v3 = vshrl.u32 %v857_v2, 7  ;;  %s1828_s26 = sadd.s32 4294967293, %s1797_s19  ;;  %s1861_s1 = sadd.s32 4294967295, %s1797_s19 }
  0x7b   : > { %1989 = vmatpush3.bf16.msra.mxu0 %v2308_v4  ;;  %v498_v21 = vrot.slane %v496_v17, 1  ;;  %v729_v32 = vrot.slane %v1817_v30, 1  ;;  %v2330_v42 = vld [vmem:[#allocation5 + $0x80] sm:$0xff]   ;;  %v2332_v43 = vld [vmem:[#allocation7 + $0x38] sm:$0xff]   ;;  %v2334_v45 = vld [vmem:[#allocation7 + $0x30] sm:$0xff]   ;;  %s3100_s13 = sld [smem:[#allocation16_spill]] }
  0x7c   : > { %2009 = vmatpush3.bf16.msra.mxu1 %v2309_v5  ;;  %1990 = vmatprep.subr.bf16.mxu0 %v2310_v6  ;;  %v2333_v44 = vld [vmem:[#allocation7 + $0x78] sm:$0xff]   ;;  %v2335_v46 = vld [vmem:[#allocation7 + $0x70] sm:$0xff]   ;;  %v2336_v47 = vld [vmem:[#allocation7 + $0x28] sm:$0xff]   ;;  %v2897_v4 = vadd.s32 16, %v2892_v3  ;;  %v861_v5 = vstv %s1828_s26  ;;  %s3101_s14 = sld [smem:[#allocation18_spill]]  ;;  %s1892_s9 = sshll.u32 %s3093_s5, 1 }
  0x7d   : > { %2010 = vmatprep.subr.bf16.mxu1 %v2311_v7  ;;  %v499_v23 = vor.u32 %v498_v21, %v494_v16  ;;  %v731_v36 = vsel %vm728_vm1, %v729_v32, %v730_v33  ;;  %v2337_v48 = vld [vmem:[#allocation7 + $0x68] sm:$0xff]   ;;  %v2338_v49 = vld [vmem:[#allocation7 + $0x20] sm:$0xff]   ;;  %v2340_v51 = vld [vmem:[#allocation7 + $0x18] sm:$0xff]   ;;  %s3102_s19 = sld [smem:[#allocation29_spill]]  ;;  %s2490_s24 = sshll.u32 %s2624_s10, 4  ;;  %s2491_s24 = int_to_ptr.vmem [resolvable:$false] %s2490_s24 }
  0x7e   : > { %v2339_v50 = vld [vmem:[#allocation7 + $0x60] sm:$0xff]   ;;  %v2341_v52 = vld [vmem:[#allocation7 + $0x58] sm:$0xff]   ;;  %v2342_v53 = vld [vmem:[#allocation7 + $0x10] sm:$0xff]   ;;  %s3105_s2 = sld [smem:[#allocation31_spill]] }
  0x7f   : > { %1991 = vmatpush3.bf16.msra.mxu0 %v2310_v6  ;;  %v504_v26 = vsel %vm492_vm0, %v499_v23, %v503_v22  ;;  %v2343_v54 = vld [vmem:[#allocation7 + $0x50] sm:$0xff]   ;;  %v2344_v55 = vld [vmem:[#allocation7 + $0x8] sm:$0xff]   ;;  %v2346_v57 = vld [vmem:[#allocation7] sm:$0xff]  }
  0x80   : > { %2011 = vmatpush3.bf16.msra.mxu1 %v2311_v7  ;;  %1992 = vmatprep.subr.bf16.mxu0 %v2312_v8  ;;  %v2345_v56 = vld [vmem:[#allocation7 + $0x48] sm:$0xff]   ;;  %v2347_v58 = vld [vmem:[#allocation7 + $0x40] sm:$0xff]   ;;  %v2888_v59 = vld [vmem:[#allocation7 + $0xb8] sm:$0xff]  }
  0x81   : > { %2012 = vmatprep.subr.bf16.mxu1 %v2313_v9  ;;  %2000 = vmatprep.mubr.bf16.mxu0 %v504_v26  ;;  %v1827_v15 = vld [vmem:[%s3095_s29] ss:$0 sm:$0xff]  ;;  %v2367_v2 = vld [vmem:[#allocation8 + $0x8] sm:$0xff]   ;;  %s439_s11 = sand.u32 1, %s3100_s13  }
  0x82   : > { %s2164_s26 = smul.u32 6, %s3101_s14  ;;  %s1796_s28 = sshll.u32 %s439_s11, 4 }
  0x83   : > { %1993 = vmatpush3.bf16.msra.mxu0 %v2312_v8  ;;  %s441_s4 = scalar_lea.vmem [#allocation10], %s1796_s28  ;;  %s2981_s13 = scalar_lea.sflag [#allocation4], %s439_s11 }
  0x84   : > { %2013 = vmatpush3.bf16.msra.mxu1 %v2313_v9  ;;  %1994 = vmatprep.subr.bf16.mxu0 %v2314_v10  ;;  %v1826_v9 = vld [vmem:[%s3094_s12] ss:$0 sm:$0xff]  ;;  %s3103_s12 = sld [smem:[#allocation30_spill]]  ;;  %s1660_s29 = sadd.s32 %s2164_s26, %s1892_s9 }
  0x85   : > { %2014 = vmatprep.subr.bf16.mxu1 %v2315_v11  ;;  %s1663_s7 = sshll.u32 %s441_s4, 4  ;;  %s2974_s7 = int_to_ptr.vmem [resolvable:$true] %s1663_s7 }
  0x86   : > { %s2486_s14 = scalar_lea.vmem %s2974_s7, 256  ;;  %p2493_p11 = scmp.lt.s32.totalorder %s2974_s7, %s2491_s24 }
  0x87   : > { %1995 = vmatpush3.bf16.msra.mxu0 %v2314_v10  ;;  %v2903_v10 = vadd.s32 8, %v2892_v3  ;;  %p2487_p1 = scmp.ne.s32.totalorder %s2974_s7, %s2486_s14 }
  0x88   : > { %2015 = vmatpush3.bf16.msra.mxu1 %v2315_v11  ;;  %1996 = vmatprep.subr.bf16.mxu0 %v2316_v19  ;;  %v864_v11 = vadd.s32 %v861_v5, %v2897_v4 }
  0x89   : > { %2016 = vmatprep.subr.bf16.mxu1 %v2317_v20  ;;  %v863_v21 = vadd.s32 %v861_v5, %v2903_v10 }
  0x8a   : > { %vm867_vm2 = vcmp.ge.s32.totalorder %v864_v11, 0  ;;  %vm870_vm3 = vcmp.lt.s32.totalorder %v864_v11, 40 }
  0x8b   : > { %1997 = vmatpush3.bf16.msra.mxu0 %v2316_v19  ;;  %vm866_vm4 = vcmp.ge.s32.totalorder %v863_v21, 0  ;;  %vm869_vm5 = vcmp.lt.s32.totalorder %v863_v21, 40  ;;  %vm2911_vm6 = vmand %vm867_vm2, %vm870_vm3 }
  0x8c   : > { %2017 = vmatpush3.bf16.msra.mxu1 %v2317_v20  ;;  %1998 = vmatprep.subr.bf16.mxu0 %v2318_v24  ;;  %v862_v20 = vadd.s32 %v861_v5, %v2892_v3  ;;  %vm872_vm9 = vmand %vm866_vm4, %vm869_vm5  ;;  %v2368_v5 = vld [vmem:[#allocation8 + $0x50] sm:$0xff]  }
  0x8d   : > { %2018 = vmatprep.subr.bf16.mxu1 %v2319_v25  ;;  %vm1848_vm12 = vmpackc.low %vm2911_vm6, %vm2911_vm6 }
  0x8e   : > { %vm865_vm7 = vcmp.ge.s32.totalorder %v862_v20, 0  ;;  %vm868_vm8 = vcmp.lt.s32.totalorder %v862_v20, 40  ;;  %v1859_v20 = vld [vmem:[%s3098_s6] ss:$0 sm:$0xff]  ;;  %s1893_s6 = sshll.u32 %s1660_s29, 7 }
  0x8f   : > { %1999 = vmatpush3.bf16.msra.mxu0 %v2318_v24  ;;  %vm871_vm10 = vmand %vm865_vm7, %vm868_vm8 }
  0x90   : > { %2019 = vmatpush3.bf16.msra.mxu1 %v2319_v25  ;;  %2024 = vmatprep.subr.bf16.mxu0 %v2323_v28  ;;  %vm1845_vm11 = vmpackc.low %vm872_vm9, %vm871_vm10 }
  0x91   : > { %2044 = vmatprep.subr.bf16.mxu1 %v2333_v44 }
  0x92   : > { %2001 = vmatmul.mubr.bf16.vlgmr.msra.gmra.mxu0 %v507_v34 }
  0x93   : > { %2021 = vmatmul.mubr.bf16.vlgmr.msra.gmra.mxu1 %v2322_v31  ;;  %2025 = vmatpush3.bf16.msra.mxu0 %v2323_v28 }
  0x94   : > { %2026 = vmatprep.subr.bf16.mxu0 %v2324_v35  ;;  %2040 = vmatprep.mubr.bf16.mxu0 %v731_v36 }
  0x95   : > { %2045 = vmatpush3.bf16.msra.mxu1 %v2333_v44 }
  0x96   : > { %2046 = vmatprep.subr.bf16.mxu1 %v2335_v46 }
  0x97   : > { %2027 = vmatpush3.bf16.msra.mxu0 %v2324_v35 }
  0x98   : > { %2028 = vmatprep.subr.bf16.mxu0 %v2325_v37 }
  0x99   : > { %2047 = vmatpush3.bf16.msra.mxu1 %v2335_v46  ;;  %v2349_v46 = vld [vmem:[#allocation7 + $0xb0] sm:$0xff]  }
  0x9a   : > { %2048 = vmatprep.subr.bf16.mxu1 %v2337_v48 }
  0x9b   : > { %2029 = vmatpush3.bf16.msra.mxu0 %v2325_v37 }
  0x9c   : > { %2030 = vmatprep.subr.bf16.mxu0 %v2326_v38 }
  0x9d   : > { %2049 = vmatpush3.bf16.msra.mxu1 %v2337_v48  ;;  %v2350_v48 = vld [vmem:[#allocation7 + $0xa8] sm:$0xff]  }
  0x9e   : > { %2050 = vmatprep.subr.bf16.mxu1 %v2339_v50 }
  0x9f   : > { %2031 = vmatpush3.bf16.msra.mxu0 %v2326_v38 }
  0xa0   : > { %2032 = vmatprep.subr.bf16.mxu0 %v2327_v39 }
  0xa1   : > { %2051 = vmatpush3.bf16.msra.mxu1 %v2339_v50  ;;  %v2352_v50 = vld [vmem:[#allocation7 + $0x98] sm:$0xff]  }
  0xa2   : > { %2052 = vmatprep.subr.bf16.mxu1 %v2341_v52 }
  0xa3   : > { %2033 = vmatpush3.bf16.msra.mxu0 %v2327_v39 }
  0xa4   : > { %2034 = vmatprep.subr.bf16.mxu0 %v2328_v40 }
  0xa5   : > { %2053 = vmatpush3.bf16.msra.mxu1 %v2341_v52  ;;  %v2354_v52 = vld [vmem:[#allocation7 + $0x88] sm:$0xff]  }
  0xa6   : > { %2054 = vmatprep.subr.bf16.mxu1 %v2343_v54 }
  0xa7   : > { %2035 = vmatpush3.bf16.msra.mxu0 %v2328_v40 }
  0xa8   : > { %2036 = vmatprep.subr.bf16.mxu0 %v2329_v41 }
  0xa9   : > { %2055 = vmatpush3.bf16.msra.mxu1 %v2343_v54  ;;  %v2356_v54 = vld [vmem:[#allocation8 + $0x38] sm:$0xff]  }
  0xaa   : > { %2056 = vmatprep.subr.bf16.mxu1 %v2345_v56 }
  0xab   : > { %2037 = vmatpush3.bf16.msra.mxu0 %v2329_v41 }
  0xac   : > { %2038 = vmatprep.subr.bf16.mxu0 %v2330_v42 }
  0xad   : > { %2057 = vmatpush3.bf16.msra.mxu1 %v2345_v56  ;;  %v2622_v56 = vmov 0.0  }
  0xae   : > { %2058 = vmatprep.subr.bf16.mxu1 %v2347_v58 }
  0xaf   : > { %2039 = vmatpush3.bf16.msra.mxu0 %v2330_v42 }
  0xb0   : > { %2064 = vmatprep.subr.bf16.mxu0 %v2332_v43 }
  0xb1   : > { %2059 = vmatpush3.bf16.msra.mxu1 %v2347_v58  ;;  %v2360_v58 = vld [vmem:[#allocation8 + $0x70] sm:$0xff]  }
  0xb2   : > { %2041 = vmatmul.mubr.bf16.vlgmr.msra.gmra.mxu0 %v730_v33  ;;  %2084 = vmatprep.subr.bf16.mxu1 %v2888_v59 }
  0xb3   : > { %2065 = vmatpush3.bf16.msra.mxu0 %v2332_v43 }
  0xb4   : > { %2066 = vmatprep.subr.bf16.mxu0 %v2334_v45 }
  0xb7   : > { %2067 = vmatpush3.bf16.msra.mxu0 %v2334_v45 }
  0xb8   : > { %2068 = vmatprep.subr.bf16.mxu0 %v2336_v47 }
  0xbb   : > { %2069 = vmatpush3.bf16.msra.mxu0 %v2336_v47 }
  0xbc   : > { %2070 = vmatprep.subr.bf16.mxu0 %v2338_v49 }
  0xbf   : > { %2071 = vmatpush3.bf16.msra.mxu0 %v2338_v49  ;;  %v2351_v49 = vld [vmem:[#allocation7 + $0xa0] sm:$0xff]  }
  0xc0   : > { %2072 = vmatprep.subr.bf16.mxu0 %v2340_v51 }
  0xc3   : > { %2073 = vmatpush3.bf16.msra.mxu0 %v2340_v51  ;;  %v2353_v51 = vld [vmem:[#allocation7 + $0x90] sm:$0xff]  }
  0xc4   : > { %2074 = vmatprep.subr.bf16.mxu0 %v2342_v53 }
  0xc7   : > { %2075 = vmatpush3.bf16.msra.mxu0 %v2342_v53  ;;  %v2355_v53 = vld [vmem:[#allocation7 + $0x80] sm:$0xff]  }
  0xc8   : > { %2076 = vmatprep.subr.bf16.mxu0 %v2344_v55 }
  0xcb   : > { %2077 = vmatpush3.bf16.msra.mxu0 %v2344_v55  ;;  %v2358_v55 = vld [vmem:[#allocation8 + $0x78] sm:$0xff]  }
  0xcc   : > { %2078 = vmatprep.subr.bf16.mxu0 %v2346_v57 }
  0xcf   : > { %2079 = vmatpush3.bf16.msra.mxu0 %v2346_v57  ;;  %v2357_v57 = vld [vmem:[#allocation8 + $0x30] sm:$0xff]  }
  0xd0   : > { %2104 = vmatprep.subr.bf16.mxu0 %v2622_v56 }
 0x152   : > { %v2002_v60 = vpop.f32.mrf.mxu0 }
 0x153   : > { %v2022_v61 = vpop.f32.mrf.mxu1 }
 0x154   : > { %v592_v62 = vpop.f32.mrf.mxu0  ;;  %v702_v7 = vadd.f32 %v2022_v61, %v2002_v60  ;;  %v2361_v60 = vld [vmem:[#allocation8 + $0x20] sm:$0xff]   ;;  %v2362_v61 = vld [vmem:[#allocation8 + $0x68] sm:$0xff]  }
 0x155   : > { %v693_v63 = vpop.f32.mrf.mxu1 }
 0x156   : > { %v2003_v0 = vpop.f32.mrf.mxu0  ;;  %v694_v12 = vadd.f32 %v693_v63, %v592_v62  ;;  %v2363_v62 = vld [vmem:[#allocation8 + $0x18] sm:$0xff]   ;;  %v2364_v63 = vld [vmem:[#allocation8 + $0x60] sm:$0xff]  }
 0x157   : > { %v2023_v1 = vpop.f32.mrf.mxu1  ;;  %v2365_v0 = vld [vmem:[#allocation8 + $0x10] sm:$0xff]  }
 0x158   : > { %v595_v6 = vpop.f32.mrf.mxu0  ;;  %v2366_v1 = vld [vmem:[#allocation8 + $0x58] sm:$0xff]  }
 0x159   : > { %v696_v14 = vpop.f32.mrf.mxu1 }
 0x15a   : > { %v697_v22 = vadd.f32 %v696_v14, %v595_v6  ;;  %v2369_v6 = vld [vmem:[#allocation8] sm:$0xff]  }
 0x172   : > { %v2042_v8 = vpop.f32.mrf.mxu0 }
 0x173   : > { %v832_v13 = vadd.f32 %v2042_v8, %v702_v7  ;;  %v2370_v7 = vld [vmem:[#allocation8 + $0x48] sm:$0xff]   ;;  %v2371_v8 = vld [vmem:[#allocation8 + $0x40] sm:$0xff]  }
 0x174   : > { %v816_v16 = vpop.f32.mrf.mxu0 }
 0x175   : > { %v842_v17 = vmul.f32 %v1826_v9, %v832_v13  ;;  %v830_v18 = vadd.f32 %v816_v16, %v694_v12  ;;  %v1263_v16 = vstv %s1861_s1  ;;  %s3104_s1 = sld [smem:[#allocation20_spill]] }
 0x176   : > { %v2043_v19 = vpop.f32.mrf.mxu0  ;;  %v1266_v21 = vadd.s32 %v1263_v16, %v2897_v4  ;;  %v1264_v4 = vadd.s32 %v1263_v16, %v2892_v3 }
 0x177   : > { %v852_v23 = vadd.f32 %v1827_v15, %v842_v17  ;;  %v840_v24 = vmul.f32 %v1826_v9, %v830_v18 }
 0x178   : > { %v819_v25 = vpop.f32.mrf.mxu0  ;;  %vm1269_vm15 = vcmp.ge.s32.totalorder %v1266_v21, 0  ;;  %vm1272_vm2 = vcmp.lt.s32.totalorder %v1266_v21, 40  ;;  %vm1270_vm7 = vcmp.lt.s32.totalorder %v1264_v4, 40 }
 0x179   : > { %v855_v26 = vmax.f32 %v852_v23, 0.0  ;;  %v850_v27 = vadd.f32 %v1827_v15, %v840_v24  ;;  %v831_v28 = vadd.f32 %v819_v25, %v697_v22  ;;  %v1860_v24 = vld [vmem:[%s3099_s3] ss:$0 sm:$0xff]  ;;  %vm1275_vm3 = vmand %vm1269_vm15, %vm1272_vm2  ;;  %s2979_s3 = scalar_lea.hbm %s3105_s2, %s1893_s6 }
 0x17b   : > { %v841_v30 = vmul.f32 %v1826_v9, %v831_v28  ;;  %v853_v31 = vmax.f32 %v850_v27, 0.0  ;;  %v882_v33 = vsel %vm2911_vm6, %v855_v26, 0.0  ;;  %v1849_v39 = vpack.c.bf16 %v855_v26, %v855_v26  ;;  %p3106_p4 = scmp.ne.s32.totalorder %s3104_s1, 0 }
 0x17c   : > { %v884_v35 = vpack.c.bf16 %v882_v33, %v882_v33  ;;  %vm1267_vm6 = vcmp.ge.s32.totalorder %v1264_v4, 0 }
 0x17d   : > { %v851_v32 = vadd.f32 %v1827_v15, %v841_v30  ;;  %v880_v37 = vsel %vm871_vm10, %v853_v31, 0.0  ;;  %v1265_v30 = vadd.s32 %v1263_v16, %v2903_v10  ;;  %p2488_p6 = pnand %p2487_p1, %p3106_p4 }
 0x17e   : > { %v921_v42 = vrot.slane %v884_v35, 1  ;;  %v1136_v45 = vrot.slane %v884_v35, 2 }
 0x17f   : > { %v854_v34 = vmax.f32 %v851_v32, 0.0  ;;  %vm1268_vm4 = vcmp.ge.s32.totalorder %v1265_v30, 0  ;;  %vm1271_vm5 = vcmp.lt.s32.totalorder %v1265_v30, 40  ;;  %p2489_p10 = pneg %p2488_p6 }
 0x180   : > { %vm1274_vm8 = vmand %vm1268_vm4, %vm1271_vm5 }
 0x181   : > { %v1846_v36 = vpack.c.bf16 %v854_v34, %v853_v31  ;;  %v881_v38 = vsel %vm872_vm9, %v854_v34, 0.0  ;;  %vm1273_vm9 = vmand %vm1267_vm6, %vm1270_vm7 }
 0x182   : > { %v883_v40 = vpack.c.bf16 %v881_v38, %v880_v37  ;;  %vm1878_vm10 = vmpackc.low %vm1274_vm8, %vm1273_vm9 }
 0x183   : > { %2080 = vmatprep.mubr.msk.bf16.mxu0 %vm1845_vm11, %v1846_v36 }
 0x184   : > { %2081 = vmatmul.mubr.msk.bf16.vlgmr.msra.gmra.mxu0 %vm1848_vm12, %v1849_v39  ;;  %v920_v41 = vrot.slane %v883_v40, 1  ;;  %v1135_v43 = vrot.slane %v883_v40, 2 }
 0x185   : > { %2105 = vmatpush3.bf16.msra.mxu0 %v2358_v55  ;;  %2120 = vmatprep.mubr.msk.bf16.mxu0 %vm2623_vm14, %v2622_v56  ;;  %v2374_v55 = vld [vmem:[#allocation8 + $0xa8] sm:$0xff]  }
 0x186   : > { %v922_v44 = vsel %vm728_vm1, %v920_v41, %v921_v42  ;;  %v1137_v47 = vsel %vm1134_vm13, %v1135_v43, %v1136_v45  ;;  %2106 = vmatprep.subr.bf16.mxu0 %v2622_v56 }
 0x187   : > { %2060 = vmatprep.mubr.bf16.mxu1 %v922_v44 }
 0x188   : > { %2061 = vmatmul.mubr.bf16.vlgmr.msra.gmra.mxu1 %v921_v42 }
 0x189   : > { %2085 = vmatpush3.bf16.msra.mxu1 %v2888_v59  ;;  %2100 = vmatprep.mubr.bf16.mxu1 %v1137_v47  ;;  %v2359_v59 = vld [vmem:[#allocation8 + $0x28] sm:$0xff]  }
 0x18a   : > { %2086 = vmatprep.subr.bf16.mxu1 %v2349_v46  ;;  %2107 = vmatpush3.bf16.msra.mxu0 %v2360_v58  ;;  %v2376_v58 = vld [vmem:[#allocation8 + $0x98] sm:$0xff]  }
 0x18b   : > { %2108 = vmatprep.subr.bf16.mxu0 %v2622_v56 }
 0x18d   : > { %2087 = vmatpush3.bf16.msra.mxu1 %v2349_v46 }
 0x18e   : > { %2088 = vmatprep.subr.bf16.mxu1 %v2350_v48  ;;  %2109 = vmatpush3.bf16.msra.mxu0 %v2362_v61  ;;  %v2379_v61 = vld [vmem:[#allocation8 + $0x80] sm:$0xff]  }
 0x18f   : > { %2110 = vmatprep.subr.bf16.mxu0 %v2622_v56 }
 0x191   : > { %2089 = vmatpush3.bf16.msra.mxu1 %v2350_v48 }
 0x192   : > { %2090 = vmatprep.subr.bf16.mxu1 %v2351_v49  ;;  %2111 = vmatpush3.bf16.msra.mxu0 %v2364_v63 }
 0x193   : > { %2112 = vmatprep.subr.bf16.mxu0 %v2622_v56 }
 0x195   : > { %2091 = vmatpush3.bf16.msra.mxu1 %v2351_v49 }
 0x196   : > { %2092 = vmatprep.subr.bf16.mxu1 %v2352_v50  ;;  %2113 = vmatpush3.bf16.msra.mxu0 %v2366_v1 }
 0x197   : > { %2114 = vmatprep.subr.bf16.mxu0 %v2622_v56 }
 0x199   : > { %2093 = vmatpush3.bf16.msra.mxu1 %v2352_v50 }
 0x19a   : > { %2094 = vmatprep.subr.bf16.mxu1 %v2353_v51  ;;  %2115 = vmatpush3.bf16.msra.mxu0 %v2368_v5 }
 0x19b   : > { %2116 = vmatprep.subr.bf16.mxu0 %v2622_v56 }
 0x19d   : > { %2095 = vmatpush3.bf16.msra.mxu1 %v2353_v51 }
 0x19e   : > { %2096 = vmatprep.subr.bf16.mxu1 %v2354_v52  ;;  %2117 = vmatpush3.bf16.msra.mxu0 %v2370_v7 }
 0x19f   : > { %2118 = vmatprep.subr.bf16.mxu0 %v2622_v56 }
 0x1a1   : > { %2097 = vmatpush3.bf16.msra.mxu1 %v2354_v52  ;;  %v2372_v52 = vld [vmem:[#allocation8 + $0xb8] sm:$0xff]  }
 0x1a2   : > { %2098 = vmatprep.subr.bf16.mxu1 %v2355_v53  ;;  %2119 = vmatpush3.bf16.msra.mxu0 %v2371_v8 }
 0x1a3   : > { %2144 = vmatprep.subr.bf16.mxu0 %v2622_v56 }
 0x1a5   : > { %2099 = vmatpush3.bf16.msra.mxu1 %v2355_v53 }
 0x1a6   : > { %2124 = vmatprep.subr.bf16.mxu1 %v2622_v56 }
 0x1a8   : > { %2101 = vmatmul.mubr.bf16.vlgmr.msra.gmra.mxu1 %v1136_v45 }
 0x1a9   : > { %2125 = vmatpush3.bf16.msra.mxu1 %v2356_v54  ;;  %2140 = vmatprep.mubr.msk.bf16.mxu1 %vm2623_vm14, %v2622_v56  ;;  %v2373_v54 = vld [vmem:[#allocation8 + $0xb0] sm:$0xff]  }
 0x1aa   : > { %2126 = vmatprep.subr.bf16.mxu1 %v2622_v56 }
 0x1ad   : > { %2127 = vmatpush3.bf16.msra.mxu1 %v2357_v57  ;;  %v2375_v57 = vld [vmem:[#allocation8 + $0xa0] sm:$0xff]  }
 0x1ae   : > { %2128 = vmatprep.subr.bf16.mxu1 %v2622_v56 }
 0x1b1   : > { %2129 = vmatpush3.bf16.msra.mxu1 %v2359_v59  ;;  %v2377_v59 = vld [vmem:[#allocation8 + $0x90] sm:$0xff]  }
 0x1b2   : > { %2130 = vmatprep.subr.bf16.mxu1 %v2622_v56 }
 0x1b5   : > { %2131 = vmatpush3.bf16.msra.mxu1 %v2361_v60  ;;  %v2378_v60 = vld [vmem:[#allocation8 + $0x88] sm:$0xff]  }
 0x1b6   : > { %2132 = vmatprep.subr.bf16.mxu1 %v2622_v56 }
 0x1b9   : > { %2133 = vmatpush3.bf16.msra.mxu1 %v2363_v62 }
 0x1ba   : > { %2134 = vmatprep.subr.bf16.mxu1 %v2622_v56 }
 0x1bd   : > { %2135 = vmatpush3.bf16.msra.mxu1 %v2365_v0 }
 0x1be   : > { %2136 = vmatprep.subr.bf16.mxu1 %v2622_v56 }
 0x1c1   : > { %2137 = vmatpush3.bf16.msra.mxu1 %v2367_v2 }
 0x1c2   : > { %2138 = vmatprep.subr.bf16.mxu1 %v2622_v56 }
 0x1c5   : > { %2139 = vmatpush3.bf16.msra.mxu1 %v2369_v6 }
 0x244   : > { %v2082_v9 = vpop.f32.mrf.mxu0 }
 0x246   : > { %v1103_v11 = vpop.f32.mrf.mxu0 }
 0x248   : > { %v2062_v12 = vpop.f32.mrf.mxu1  ;;  %v2083_v13 = vpop.f32.mrf.mxu0 }
 0x249   : > { %v1112_v18 = vadd.f32 %v2082_v9, %v2062_v12 }
 0x24a   : > { %v1007_v14 = vpop.f32.mrf.mxu1  ;;  %v1106_v28 = vpop.f32.mrf.mxu0 }
 0x24b   : > { %v1104_v22 = vadd.f32 %v1103_v11, %v1007_v14 }
 0x24c   : > { %v2063_v15 = vpop.f32.mrf.mxu1 }
 0x24d   : > { %v1890_v15 = vld [vmem:[%s3103_s12] ss:$0 sm:$0xff] }
 0x24e   : > { %v1010_v17 = vpop.f32.mrf.mxu1 }
 0x24f   : > { %v1107_v31 = vadd.f32 %v1106_v28, %v1010_v17 }
 0x268   : > { %v2102_v19 = vpop.f32.mrf.mxu1 }
 0x269   : > { %v1238_v23 = vadd.f32 %v2102_v19, %v1112_v18 }
 0x26a   : > { %v1222_v25 = vpop.f32.mrf.mxu1 }
 0x26b   : > { %v1248_v26 = vmul.f32 %v1859_v20, %v1238_v23  ;;  %v1236_v27 = vadd.f32 %v1222_v25, %v1104_v22 }
 0x26c   : > { %v2103_v29 = vpop.f32.mrf.mxu1 }
 0x26d   : > { %v1258_v32 = vadd.f32 %v1860_v24, %v1248_v26  ;;  %v1246_v33 = vmul.f32 %v1859_v20, %v1236_v27 }
 0x26e   : > { %v1225_v34 = vpop.f32.mrf.mxu1 }
 0x26f   : > { %v1261_v35 = vmax.f32 %v1258_v32, 0.0  ;;  %v1256_v36 = vadd.f32 %v1860_v24, %v1246_v33  ;;  %v1237_v37 = vadd.f32 %v1225_v34, %v1107_v31 }
 0x271   : > { %v1247_v38 = vmul.f32 %v1859_v20, %v1237_v37  ;;  %v1284_v39 = vsel %vm1275_vm3, %v1261_v35, 0.0  ;;  %v1259_v40 = vmax.f32 %v1256_v36, 0.0 }
 0x272   : > { %v1286_v42 = vpack.c.bf16 %v1284_v39, %v1284_v39 }
 0x273   : > { %v1257_v41 = vadd.f32 %v1860_v24, %v1247_v38  ;;  %v1282_v3 = vsel %vm1273_vm9, %v1259_v40, 0.0 }
 0x274   : > { %v1328_v47 = vshll.u32 %v1286_v42, 16  ;;  %v1531_v63 = vrot.slane %v1286_v42, 1 }
 0x275   : > { %v1260_v10 = vmax.f32 %v1257_v41, 0.0 }
 0x276   : > { %v1330_v51 = vrot.slane %v1328_v47, 1 }
 0x277   : > { %v1879_v43 = vpack.c.bf16 %v1260_v10, %v1259_v40  ;;  %v1283_v44 = vsel %vm1274_vm8, %v1260_v10, 0.0 }
 0x278   : > { %v1285_v45 = vpack.c.bf16 %v1283_v44, %v1282_v3 }
 0x279   : > { %2141 = vmatmul.mubr.msk.bf16.vlgmr.msra.gmra.mxu1 %vm1878_vm10, %v1879_v43 }
 0x27a   : > { %v1323_v46 = vshll.u32 %v1285_v45, 16  ;;  %v1321_v48 = vshrl.u32 %v1285_v45, 16  ;;  %v1530_v62 = vrot.slane %v1285_v45, 1 }
 0x27c   : > { %v1325_v49 = vrot.slane %v1323_v46, 1  ;;  %v1532_v0 = vsel %vm728_vm1, %v1530_v62, %v1531_v63 }
 0x27e   : > { %v1326_v50 = vor.u32 %v1325_v49, %v1321_v48 }
 0x280   : > { %v1331_v53 = vsel %vm492_vm0, %v1326_v50, %v1330_v51 }
 0x281   : > { %2121 = vmatmul.mubr.bf16.vlgmr.msra.gmra.mxu0 %v1331_v53 }
 0x282   : > { %2145 = vmatpush3.bf16.msra.mxu0 %v2372_v52  ;;  %2160 = vmatprep.mubr.msk.bf16.mxu0 %vm2623_vm14, %v2622_v56 }
 0x283   : > { %2146 = vmatprep.subr.bf16.mxu0 %v2622_v56 }
 0x286   : > { %2147 = vmatpush3.bf16.msra.mxu0 %v2373_v54 }
 0x287   : > { %2148 = vmatprep.subr.bf16.mxu0 %v2622_v56 }
 0x28a   : > { %2149 = vmatpush3.bf16.msra.mxu0 %v2374_v55 }
 0x28b   : > { %2150 = vmatprep.subr.bf16.mxu0 %v2622_v56 }
 0x28e   : > { %2151 = vmatpush3.bf16.msra.mxu0 %v2375_v57 }
 0x28f   : > { %2152 = vmatprep.subr.bf16.mxu0 %v2622_v56 }
 0x292   : > { %2153 = vmatpush3.bf16.msra.mxu0 %v2376_v58 }
 0x293   : > { %2154 = vmatprep.subr.bf16.mxu0 %v2622_v56 }
 0x296   : > { %2155 = vmatpush3.bf16.msra.mxu0 %v2377_v59 }
 0x297   : > { %2156 = vmatprep.subr.bf16.mxu0 %v2622_v56 }
 0x29a   : > { %2157 = vmatpush3.bf16.msra.mxu0 %v2378_v60 }
 0x29b   : > { %2158 = vmatprep.subr.bf16.mxu0 %v2622_v56  ;;  %v1889_v56 = vld [vmem:[%s3102_s19] ss:$0 sm:$0xff]  ;;  %s2492_s19 = scalar_lea.vmem %s2491_s24, 512 }
 0x29c   : > { %p2494_p13 = scmp.lt.s32.totalorder %s2492_s19, %s2486_s14 }
 0x29e   : > { %2159 = vmatpush3.bf16.msra.mxu0 %v2379_v61  ;;  %p2495_p5 = por %p2494_p13, %p2493_p11 }
 0x2a0   : > { %p2496_p12 = pnand %p2495_p5, %p2489_p10 }
 0x2a1   : > { %2161 = vmatmul.mubr.bf16.vlgmr.msra.gmra.mxu0 %v1532_v0 }
 0x339   : > { %v1504_v1 = vpop.f32.mrf.mxu1 }
 0x33b   : > { %v2142_v2 = vpop.f32.mrf.mxu1 }
 0x33d   : > { %v1507_v5 = vpop.f32.mrf.mxu1 }
 0x33f   : > { %v2143_v6 = vpop.f32.mrf.mxu1 }
 0x341   : > { %v1415_v7 = vpop.f32.mrf.mxu0 }
 0x342   : > { %v1505_v12 = vadd.f32 %v1504_v1, %v1415_v7 }
 0x343   : > { %v2122_v8 = vpop.f32.mrf.mxu0 }
 0x345   : > { %v1418_v9 = vpop.f32.mrf.mxu0 }
 0x346   : > { %v1508_v17 = vadd.f32 %v1507_v5, %v1418_v9 }
 0x347   : > { %v2123_v11 = vpop.f32.mrf.mxu0 }
 0x361   : > { %v1616_v13 = vpop.f32.mrf.mxu0 }
 0x362   : > { %v1623_v14 = vadd.f32 %v1616_v13, %v1505_v12 }
 0x363   : > { %v2162_v16 = vpop.f32.mrf.mxu0 }
 0x364   : > { %v1632_v18 = vmul.f32 %v1889_v56, %v1623_v14 }
 0x365   : > { %v1619_v19 = vpop.f32.mrf.mxu0 }
 0x366   : > { %v1641_v20 = vadd.f32 %v1890_v15, %v1632_v18  ;;  %v1624_v21 = vadd.f32 %v1619_v19, %v1508_v17 }
 0x367   : > { %v2163_v22 = vpop.f32.mrf.mxu0 }
 0x368   : > { %v1643_v23 = vmax.f32 %v1641_v20, 0.0  ;;  %v1633_v24 = vmul.f32 %v1889_v56, %v1624_v21 }
 0x36a   : > { %1645 = vst [vmem:[%s441_s4] sm:$0xff] %v1643_v23  ;;  %v1642_v25 = vadd.f32 %v1890_v15, %v1633_v24 }
 0x36c   : > { %v1644_v26 = vmax.f32 %v1642_v25, 0.0 }
 0x36e   : > { %1646 = vst [vmem:[%s441_s4 + $0x8] sm:$0xff] %v1644_v26 }
 0x36f   : > { %2499 = shalt.err (!%p2496_p12)
}
 0x370   : > { %s2500_s11 = scalar_lea.hbm %s2979_s3, 256  ;;  %s2504_s30 = scalar_lea.hbm %s3105_s2, 1536 }
 0x371   : > { %p2501_p0 = scmp.ne.s32.totalorder %s2979_s3, %s2500_s11  ;;  %p2505_p7 = scmp.lt.s32.totalorder %s2979_s3, %s3105_s2 }
 0x372   : > { %p2506_p8 = scmp.lt.s32.totalorder %s2504_s30, %s2500_s11 }
 0x373   : > { %p2502_p2 = pnand %p2501_p0, %p3106_p4 }
 0x374   : > { %p2507_p9 = por %p2506_p8, %p2505_p7 }
 0x375   : > { %p2503_p3 = pneg %p2502_p2 }
 0x377   : > { %p2508_p1 = pnand %p2507_p9, %p2503_p3 }
 0x379   : > { %2511 = shalt.err (!%p2508_p1)
}
 0x37a   : > { %s2625_s28 = smov 128   ;;  %s2626_s29 = smov 8  }
 0x37b   : > { %2179 = dma.vmem_to_hbm [thread:$0]  (%p3106_p4), %s2974_s7, 256, %s2979_s3, %s2981_s13, %s2625_s28, %s2625_s28, %s2626_s29  }
 0x37c PF: > { %s3107_s4 = sld [smem:[#allocation15_spill]]  ;;  %p2206_p6 = scmp.ge.s32.totalorder %s2614_s23, 2 }
 0x37d   : > { %s3108_s6 = sld [smem:[#allocation21_spill]] }
 0x382   : > { %s1678_s5 = sand.u32 1, %s3107_s4  }
 0x383   : > { %p3109_p10 = scmp.ne.s32.totalorder %s3108_s6, 0  ;;  %s1679_s8 = scalar_lea.sflag [#allocation4], %s1678_s5 }
 0x385   : > { %p2196_p11 = pnand %p2206_p6, %p3109_p10 }
 0x387   : > { %p2197_p13 = pneg %p2196_p11 }
 0x389   : > { %2569 = dma.done.wait (%p2197_p13), %s1679_s8, 256  }
 0x38a   : > { %2571 = vsyncadd (%p2197_p13), %s1679_s8, 4294967040  ;;  %s28_s23 = sadd.s32 1, %s2614_s23   ;;  %s3110_s13 = sld [smem:[#allocation16_spill]] }
 0x38b   : > { %p25_p5 = scmp.ge.s32.totalorder %s28_s23, 8   ;;  %s3111_s19 = sld [smem:[#allocation19_spill]] }
 0x38c   : > { %s3112_s1 = smov %s3122_s16  ;;  %s3113_s14 = smov %s2582_s15 }
 0x38d   : > { %s3114_s15 = smov %s2836_s20  ;;  %s3115_s16 = smov %s2590_s17 }
 0x38e   : > { %s3116_s17 = smov %s2594_s18  ;;  %s3117_s18 = smov %s2839_s21 }
 0x38f   : > { %s3118_s20 = smov %s2610_s22  ;;  %s3119_s21 = smov %s3112_s1 }
 0x390   : > { %s3120_s22 = smov %s3126_s25  ;;  %27 = sbr.rel (!%p25_p5) target bundleno = 22 (0x16), region = 123 }
 0x395   :  { %1684 = vsyncpa [#allocation3], 1 }
 0x396   :  { %1686 = vsyncpa [#allocation3 + $0x1], 1 }
 0x397   :  { %1687 = vsyncpa [#allocation6], 1 }
 0x398   :  { %1688 = vsyncpa [#allocation9], 1 }
 0x399   :  { %1689 = vsyncpa [#allocation4], 1 }
 0x39a   :  { %1691 = vsyncpa [#allocation4 + $0x1], 1 }

// kernel: tpu_custom_call.1
= control target key start
LH: loop header
LB: loop body
LE: loop exit
PB: predicated region body
PF: predicated region fallthrough
CT: control target
= control target key end

     0   :  { %s3041_s0 = inlined_call_operand.hbm [shape: bf16[6,32,128], index: 0, kind: input, shape index: {}]   ;;  %s3042_s1 = inlined_call_operand.hbm [shape: bf16[3,128,128], index: 1, kind: input, shape index: {}]   ;;  %s3043_s2 = inlined_call_operand.vmem [shape: f32[1,128], index: 2, kind: input, shape index: {}]   ;;  %s3044_s3 = inlined_call_operand.vmem [shape: f32[1,128], index: 3, kind: input, shape index: {}]   ;;  %s3045_s4 = inlined_call_operand.hbm [shape: bf16[3,128,128], index: 4, kind: input, shape index: {}]   ;;  %s3046_s5 = inlined_call_operand.vmem [shape: f32[1,128], index: 5, kind: input, shape index: {}]   ;;  %s3047_s6 = inlined_call_operand.vmem [shape: f32[1,128], index: 6, kind: input, shape index: {}]   ;;  %s3048_s7 = inlined_call_operand.hbm [shape: bf16[3,128,128], index: 7, kind: input, shape index: {}]   ;;  %s3049_s8 = inlined_call_operand.vmem [shape: f32[1,128], index: 8, kind: input, shape index: {}]   ;;  %s3050_s9 = inlined_call_operand.vmem [shape: f32[1,128], index: 9, kind: input, shape index: {}]   ;;  %s3051_s10 = inlined_call_operand.hbm [shape: f32[2,48,128], index: 10, kind: output, shape index: {}]  }
   0x1   :  { %3063 = sst [smem:[#allocation22_spill]] %s3042_s1 }
   0x2   :  { %3064 = sst [smem:[#allocation23_spill]] %s3043_s2 }
   0x3   :  { %3065 = sst [smem:[#allocation24_spill]] %s3044_s3 }
   0x4   :  { %3066 = sst [smem:[#allocation25_spill]] %s3045_s4 }
   0x5   :  { %3067 = sst [smem:[#allocation26_spill]] %s3046_s5 }
   0x6   :  { %3068 = sst [smem:[#allocation27_spill]] %s3047_s6 }
   0x7   :  { %3069 = sst [smem:[#allocation28_spill]] %s3048_s7 }
   0x8   :  { %3070 = sst [smem:[#allocation29_spill]] %s3049_s8 }
   0x9   :  { %3071 = sst [smem:[#allocation30_spill]] %s3050_s9 }
   0xa   :  { %3072 = sst [smem:[#allocation31_spill]] %s3051_s10 }
   0xb   :  { %15 = vsyncpa [#allocation3], 0 }
   0xc   :  { %17 = vsyncpa [#allocation3 + $0x1], 0 }
   0xd   :  { %18 = vsyncpa [#allocation6], 0 }
   0xe   :  { %19 = vsyncpa [#allocation9], 0 }
   0xf   :  { %20 = vsyncpa [#allocation4], 0 }
  0x10   :  { %22 = vsyncpa [#allocation4 + $0x1], 0  ;;  %s2682_s13 = smov 0   ;;  %s2684_s14 = smov 0  }
  0x11   :  { %s2686_s15 = smov 0   ;;  %s2688_s16 = smov 0  }
  0x12   :  { %s2690_s17 = smov 0   ;;  %s2692_s18 = smov 0  }
  0x13   :  { %s2694_s19 = smov 0   ;;  %s2696_s20 = smov 0  }
  0x14   :  { %s2698_s21 = smov 0   ;;  %s2700_s22 = smov 0  }
  0x15   :  { %s2702_s23 = smov 0  }
  0x16 LB: > { %3073 = sst [smem:[#allocation15_spill]] %s2574_s13  ;;  %s1781_s24 = sadd.s32 4294967295, %s2614_s23   ;;  %s2614_s23 = sphi %s2702_s23, %s28_s23   ;;  %s2610_s22 = sphi %s2700_s22, %s3120_s22   ;;  %s2606_s21 = sphi %s2698_s21, %s3119_s21   ;;  %s2602_s20 = sphi %s2696_s20, %s3118_s20   ;;  %s2598_s19 = sphi %s2694_s19, %s3111_s19   ;;  %s2594_s18 = sphi %s2692_s18, %s3117_s18   ;;  %s2590_s17 = sphi %s2690_s17, %s3116_s17   ;;  %s2586_s16 = sphi %s2688_s16, %s3115_s16   ;;  %s2582_s15 = sphi %s2686_s15, %s3114_s15   ;;  %s2578_s14 = sphi %s2684_s14, %s3113_s14   ;;  %s2574_s13 = sphi %s2682_s13, %s3110_s13  }
  0x17   : > { %3074 = sst [smem:[#allocation16_spill]] %s2578_s14  ;;  %s1782_s25 = sadd.s32 4294967294, %s2614_s23  }
  0x18   : > { %3075 = sst [smem:[#allocation17_spill]] %s2598_s19  ;;  %p64_p0 = scmp.ne.s32.totalorder %s2590_s17, %s2586_s16 }
  0x19   : > { %3076 = sst [smem:[#allocation18_spill]] %s2602_s20  ;;  %p2738_p1 = scmp.eq.s32.totalorder %s1781_s24, 0 }
  0x1a   : > { %3077 = sst [smem:[#allocation19_spill]] %s2606_s21  ;;  %p278_p2 = scmp.ne.s32.totalorder %s2582_s15, %s2578_s14 }
  0x1b   : > { %p279_p3 = scmp.eq.s32.totalorder %s1781_s24, 5  ;;  %p2746_p4 = por %p2738_p1, %p64_p0 }
  0x1c   : > { %p284_p5 = scmp.ne.s32.totalorder %s2578_s14, %s2574_s13  ;;  %p285_p7 = scmp.eq.s32.totalorder %s1782_s25, 5 }
  0x1d   : > { %p2752_p6 = por %p279_p3, %p278_p2  ;;  %p1783_p8 = scmp.ge.s32.totalorder %s2614_s23, 1 }
  0x1e   : > { %p292_p9 = scmp.lt.s32.totalorder %s2614_s23, 7  ;;  %p2758_p10 = por %p285_p7, %p284_p5 }
  0x1f   : > { %s3080_s28 = scalar_select %p2752_p6, 1, 0 }
  0x20   : > { %s3082_s29 = scalar_select %p2758_p10, 1, 0 }
  0x21   : > { %3081 = sst [smem:[#allocation20_spill]] %s3080_s28  ;;  %p2762_p11 = pnand %p1783_p8, %p292_p9 }
  0x22   : > { %3083 = sst [smem:[#allocation21_spill]] %s3082_s29  ;;  %s2616_s11 = smov [#allocation5]  }
  0x23   : > { %s304_s12 = sshll.u32 %s2616_s11, 4  ;;  %p2181_p12 = pneg %p2762_p11  ;;  %s305_s12 = int_to_ptr.vmem [resolvable:$true] %s304_s12 }
  0x24   : > { %s2617_s24 = smov [#allocation7]   ;;  %s2391_s29 = scalar_lea.vmem %s305_s12, 3072 }
  0x25   : > { %p2770_p13 = pnand %p2181_p12, %p2738_p1  ;;  %s323_s25 = sshll.u32 %s2617_s24, 4  ;;  %s324_s25 = int_to_ptr.vmem [resolvable:$true] %s323_s25 }
  0x26   : > { %p2392_p2 = scmp.ne.s32.totalorder %s305_s12, %s2391_s29  ;;  %p2399_p7 = scmp.lt.s32.totalorder %s305_s12, %s305_s12 }
  0x27   : > { %p2382_p0 = pneg %p2770_p13  ;;  %p2400_p8 = scmp.lt.s32.totalorder %s2391_s29, %s2391_s29 }
  0x29   : > { %p2394_p3 = pnand %p2392_p2, %p2382_p0  ;;  %p2401_p9 = por %p2400_p8, %p2399_p7 }
  0x2b   : > { %p2395_p5 = pneg %p2394_p3 }
  0x2d   : > { %p2402_p12 = pnand %p2401_p9, %p2395_p5 }
  0x2f   : > { %2405 = shalt.err (!%p2402_p12)
}
  0x30   : > { %s3057_s11 = smov 64   ;;  %s3058_s13 = smov 4  }
  0x31   : > { %s3086_s1 = sld [smem:[#allocation22_spill]]  ;;  %s2417_s28 = scalar_lea.vmem %s324_s25, 3072 }
  0x32   : > { %p2418_p2 = scmp.ne.s32.totalorder %s324_s25, %s2417_s28  ;;  %p2425_p5 = scmp.lt.s32.totalorder %s324_s25, %s324_s25 }
  0x33   : > { %p2426_p8 = scmp.lt.s32.totalorder %s2417_s28, %s2417_s28 }
  0x34   : > { %p2420_p3 = pnand %p2418_p2, %p2382_p0 }
  0x35   : > { %p2427_p9 = por %p2426_p8, %p2425_p5 }
  0x36   : > { %p2421_p7 = pneg %p2420_p3 }
  0x37   : > { %2184 = dma.hbm_to_vmem [thread:$0]  (!%p2770_p13), %s3086_s1, 3072, %s305_s12, [#allocation6], %s3057_s11, %s3057_s11, %s3058_s13  }
  0x38   : > { %p2428_p12 = pnand %p2427_p9, %p2421_p7 }
  0x3a   : > { %2431 = shalt.err (!%p2428_p12)
}
  0x3b   : > { %s3087_s4 = sld [smem:[#allocation25_spill]]  ;;  %s2620_s10 = smov [#allocation8]  }
  0x3c   : > { %s342_s12 = sshll.u32 %s2620_s10, 4  ;;  %s343_s12 = int_to_ptr.vmem [resolvable:$true] %s342_s12 }
  0x3d   : > { %s2443_s24 = scalar_lea.vmem %s343_s12, 3072  ;;  %p2451_p5 = scmp.lt.s32.totalorder %s343_s12, %s343_s12 }
  0x3e   : > { %p2444_p2 = scmp.ne.s32.totalorder %s343_s12, %s2443_s24  ;;  %p2452_p8 = scmp.lt.s32.totalorder %s2443_s24, %s2443_s24 }
  0x40   : > { %p2446_p3 = pnand %p2444_p2, %p2382_p0  ;;  %p2453_p9 = por %p2452_p8, %p2451_p5 }
  0x41   : > { %2187 = dma.hbm_to_vmem [thread:$0]  (!%p2770_p13), %s3087_s4, 3072, %s324_s25, [#allocation6], %s3057_s11, %s3057_s11, %s3058_s13  }
  0x42   : > { %p2447_p7 = pneg %p2446_p3 }
  0x44   : > { %p2454_p12 = pnand %p2453_p9, %p2447_p7 }
  0x46   : > { %2457 = shalt.err (!%p2454_p12)
}
  0x47   : > { %s3088_s7 = sld [smem:[#allocation28_spill]]  ;;  %s37_s16 = sadd.s32 1, %s2606_s21 }
  0x48   : > { %p38_p0 = scmp.ge.s32.totalorder %s37_s16, 3  ;;  %s40_s25 = sadd.s32 1, %s2610_s22 }
  0x49   : > { %s44_s29 = smul.u32 3, %s2610_s22  ;;  %p58_p2 = scmp.ne.s32.totalorder %s2594_s18, %s2590_s17 }
  0x4a   : > { %s3122_s16 = smov (%p38_p0, %s37_s16), 0  ;;  %s3124_s25 = smov (!%p38_p0, %s40_s25), %s2610_s22 }
  0x4b   : > { %s51_s10 = sadd.s32 1, %s2594_s18  ;;  %p59_p3 = scmp.eq.s32.totalorder %s2614_s23, 0 }
  0x4c   : > { %p42_p7 = scmp.ge.s32.totalorder %s3124_s25, 2  ;;  %s45_s24 = sadd.s32 %s2606_s21, %s44_s29 }
  0x4d   : > { %2190 = dma.hbm_to_vmem [thread:$0]  (!%p2770_p13), %s3088_s7, 3072, %s343_s12, [#allocation9], %s3057_s11, %s3057_s11, %s3058_s13  }
  0x4e   : > { %p2820_p13 = por %p59_p3, %p58_p2  ;;  %s264_s9 = ssub.s32 %s2606_s21, %s3122_s16 }
  0x4f   : > { %s3126_s25 = smov (%p42_p7, %s3124_s25), 0  ;;  %s268_s28 = sadd.s32 1, %s2582_s15 }
  0x50   : > { %s362_s11 = sand.u32 1, %s2594_s18   ;;  %s46_s13 = smul.u32 3, %s3126_s25 }
  0x51   : > { %s263_s1 = ssub.s32 %s2610_s22, %s3126_s25  ;;  %p2202_p5 = scmp.lt.s32.totalorder %s2614_s23, 6 }
  0x52   : > { %s265_s4 = sor.u32 %s264_s9, %s263_s1  ;;  %s47_s7 = sadd.s32 %s46_s13, %s3122_s16 }
  0x53   : > { %p266_p8 = scmp.eq.s32.totalorder %s265_s4, 0  ;;  %s48_s29 = ssub.s32 %s45_s24, %s47_s7 }
  0x54   : > { %s1788_s8 = sshll.u32 %s362_s11, 4  ;;  %p49_p9 = scmp.eq.s32.totalorder %s48_s29, 0 }
  0x55   : > { %s2836_s20 = scalar_select %p266_p8, %s2582_s15, %s268_s28  }
  0x56   : > { %s2839_s21 = scalar_select %p49_p9, %s2594_s18, %s51_s10  }
  0x57   : > { %s1896_s14 = sshll.u32 %s45_s24, 8  ;;  %s366_s6 = scalar_lea.vmem [#allocation2], %s1788_s8 }
  0x58   : > { %s375_s5 = sshll.u32 %s366_s6, 4  ;;  %s374_s19 = scalar_lea.hbm %s3041_s0, %s1896_s14  ;;  %s376_s5 = int_to_ptr.vmem [resolvable:$true] %s375_s5 }
  0x59   : > { %p2848_p12 = pnand %p2202_p5, %p2820_p13  ;;  %s363_s4 = scalar_lea.sflag [#allocation3], %s362_s11 }
  0x5a   : > { %s2471_s7 = scalar_lea.vmem %s376_s5, 256  ;;  %s2621_s6 = smov [#allocation2]  }
  0x5b   : > { %p2460_p0 = pneg %p2848_p12  ;;  %p2472_p2 = scmp.ne.s32.totalorder %s376_s5, %s2471_s7 }
  0x5c   : > { %s2476_s8 = sshll.u32 %s2621_s6, 4  ;;  %s2477_s8 = int_to_ptr.vmem [resolvable:$false] %s2476_s8 }
  0x5d   : > { %p2474_p3 = pnand %p2472_p2, %p2460_p0  ;;  %s2478_s2 = scalar_lea.vmem %s2477_s8, 512 }
  0x5e   : > { %p2479_p8 = scmp.lt.s32.totalorder %s376_s5, %s2477_s8  ;;  %p2480_p9 = scmp.lt.s32.totalorder %s2478_s2, %s2471_s7 }
  0x5f   : > { %p2475_p7 = pneg %p2474_p3 }
  0x60   : > { %p2481_p10 = por %p2480_p9, %p2479_p8 }
  0x62   : > { %p2482_p6 = pnand %p2481_p10, %p2475_p7 }
  0x64   : > { %2485 = shalt.err (!%p2482_p6)
}
  0x65   : > { %s3091_s3 = smov 4   ;;  %s3092_s13 = smov 64  }
  0x66   : > { %2194 = dma.hbm_to_vmem [thread:$0]  (!%p2848_p12), %s374_s19, 256, %s376_s5, %s363_s4, %s3092_s13, %s3092_s13, %s3091_s3  }
  0x67   : > { %387 = sbr.rel (%p2762_p11) target bundleno = 892 (0x37c), region = 60  ;;  %s389_s14 = sand.u32 (!%p2762_p11), 1, %s2590_s17  }
  0x68   : > { %s1792_s11 = sshll.u32 (!%p2762_p11), %s389_s14, 4  ;;  %s390_s10 = scalar_lea.sflag (!%p2762_p11), [#allocation3], %s389_s14 }
  0x69   : > { %s2862_s24 = scalar_lea.vmem (!%p2762_p11), [#allocation2], %s1792_s11 }
  0x6c   : > { %2557 = dma.done.wait (%p2746_p4), %s390_s10, 256  }
  0x6d   : > { %2559 = vsyncadd (%p2746_p4), %s390_s10, 4294967040 }
  0x6e   : > { %2561 = dma.done.wait (%p2738_p1), [#allocation6], 6144  }
  0x6f   : > { %2563 = vsyncadd (%p2738_p1), [#allocation6], 4294961152 }
  0x70   : > { %2565 = dma.done.wait (%p2738_p1), [#allocation9], 3072  }
  0x71   : > { %2567 = vsyncadd (%p2738_p1), [#allocation9], 4294964224  ;;  %v2304_v0 = vld [vmem:[#allocation5 + $0x78] sm:$0xff]   ;;  %v2306_v2 = vld [vmem:[#allocation5 + $0x70] sm:$0xff]   ;;  %vm492_vm0 = vsmask.f32 7424 }
  0x72   : > { %v2305_v1 = vld [vmem:[#allocation5 + $0x38] sm:$0xff]   ;;  %1984 = vmatprep.subr.bf16.mxu0 %v2304_v0  ;;  %v2307_v3 = vld [vmem:[#allocation5 + $0x30] sm:$0xff]   ;;  %v2308_v4 = vld [vmem:[#allocation5 + $0x68] sm:$0xff]   ;;  %vm728_vm1 = vcmask 1046528   ;;  %s3093_s5 = sld [smem:[#allocation17_spill]]  ;;  %vm1134_vm13 = vcmask 1045504  }
  0x73   : > { %2004 = vmatprep.subr.bf16.mxu1 %v2305_v1  ;;  %1985 = vmatpush3.bf16.msra.mxu0 %v2304_v0  ;;  %v2309_v5 = vld [vmem:[#allocation5 + $0x28] sm:$0xff]   ;;  %v2310_v6 = vld [vmem:[#allocation5 + $0x60] sm:$0xff]   ;;  %v2312_v8 = vld [vmem:[#allocation5 + $0x58] sm:$0xff]   ;;  %s3094_s12 = sld [smem:[#allocation23_spill]]  ;;  %vm2623_vm14 = vmmov 0   ;;  %s2624_s10 = smov [#allocation10]  }
  0x74   : > { %2005 = vmatpush3.bf16.msra.mxu1 %v2305_v1  ;;  %1986 = vmatprep.subr.bf16.mxu0 %v2306_v2  ;;  %v2311_v7 = vld [vmem:[#allocation5 + $0x20] sm:$0xff]   ;;  %v2313_v9 = vld [vmem:[#allocation5 + $0x18] sm:$0xff]   ;;  %v2314_v10 = vld [vmem:[#allocation5 + $0x50] sm:$0xff]   ;;  %s3095_s29 = sld [smem:[#allocation24_spill]] }
  0x75   : > { %2006 = vmatprep.subr.bf16.mxu1 %v2307_v3  ;;  %v2315_v11 = vld [vmem:[#allocation5 + $0x10] sm:$0xff]   ;;  %v2879_v15 = vld [vmem:[%s2862_s24 + $0x8] ss:$0 sps:$4 sm:$0xff]   ;;  %v2318_v24 = vld [vmem:[#allocation5 + $0x40] sm:$0xff]   ;;  %s3098_s6 = sld [smem:[#allocation26_spill]] }
  0x76   : > { %v447_v12 = vld [vmem:[%s2862_s24] sm:$0xf]  ;;  %v448_v13 = vld [vmem:[%s2862_s24 + $0x4] sm:$0xf]  ;;  %v501_v18 = vshll.u32 %v2879_v15, 16  ;;  %v2316_v19 = vld [vmem:[#allocation5 + $0x48] sm:$0xff]  }
  0x77   : > { %1987 = vmatpush3.bf16.msra.mxu0 %v2306_v2  ;;  %v1798_v14 = vcombine.low %v447_v12, %v448_v13  ;;  %v2317_v20 = vld [vmem:[#allocation5 + $0x8] sm:$0xff]   ;;  %v2319_v25 = vld [vmem:[#allocation5] sm:$0xff]   ;;  %v505_v27 = vshrl.u32 %v2879_v15, 16  ;;  %v2323_v28 = vld [vmem:[#allocation5 + $0xb8] sm:$0xff]   ;;  %v730_v33 = vrot.slane %v2879_v15, 1  ;;  %v857_v2 = vlaneseq  ;;  %s3099_s3 = sld [smem:[#allocation27_spill]] }
  0x78   : > { %2007 = vmatpush3.bf16.msra.mxu1 %v2307_v3  ;;  %1988 = vmatprep.subr.bf16.mxu0 %v2308_v4  ;;  %v503_v22 = vrot.slane %v501_v18, 1  ;;  %v707_v29 = vld [vmem:[%s2862_s24] sm:$0xe]  ;;  %v2322_v31 = vld [vmem:[%s2862_s24 + $0x8] ss:$0 sps:$4 sm:$0x77]  }
  0x79   : > { %2008 = vmatprep.subr.bf16.mxu1 %v2309_v5  ;;  %v494_v16 = vshrl.u32 %v1798_v14, 16  ;;  %v496_v17 = vshll.u32 %v1798_v14, 16  ;;  %2020 = vmatprep.mubr.bf16.mxu1 %v1798_v14  ;;  %v1817_v30 = vcombine.low %v707_v29, %v448_v13  ;;  %v2324_v35 = vld [vmem:[#allocation5 + $0xb0] sm:$0xff]   ;;  %v2325_v37 = vld [vmem:[#allocation5 + $0xa8] sm:$0xff]   ;;  %v2326_v38 = vld [vmem:[#allocation5 + $0xa0] sm:$0xff]   ;;  %s1797_s19 = sshll.u32 %s3093_s5, 4 }
  0x7a   : > { %v507_v34 = vor.u32 %v505_v27, %v503_v22  ;;  %v2327_v39 = vld [vmem:[#allocation5 + $0x98] sm:$0xff]   ;;  %v2328_v40 = vld [vmem:[#allocation5 + $0x90] sm:$0xff]   ;;  %v2329_v41 = vld [vmem:[#allocation5 + $0x88] sm:$0xff]   ;;  %v2892_v3 = vshrl.u32 %v857_v2, 7  ;;  %s1828_s26 = sadd.s32 4294967293, %s1797_s19  ;;  %s1861_s1 = sadd.s32 4294967295, %s1797_s19 }
  0x7b   : > { %1989 = vmatpush3.bf16.msra.mxu0 %v2308_v4  ;;  %v498_v21 = vrot.slane %v496_v17, 1  ;;  %v729_v32 = vrot.slane %v1817_v30, 1  ;;  %v2330_v42 = vld [vmem:[#allocation5 + $0x80] sm:$0xff]   ;;  %v2332_v43 = vld [vmem:[#allocation7 + $0x38] sm:$0xff]   ;;  %v2334_v45 = vld [vmem:[#allocation7 + $0x30] sm:$0xff]   ;;  %s3100_s13 = sld [smem:[#allocation16_spill]] }
  0x7c   : > { %2009 = vmatpush3.bf16.msra.mxu1 %v2309_v5  ;;  %1990 = vmatprep.subr.bf16.mxu0 %v2310_v6  ;;  %v2333_v44 = vld [vmem:[#allocation7 + $0x78] sm:$0xff]   ;;  %v2335_v46 = vld [vmem:[#allocation7 + $0x70] sm:$0xff]   ;;  %v2336_v47 = vld [vmem:[#allocation7 + $0x28] sm:$0xff]   ;;  %v2897_v4 = vadd.s32 16, %v2892_v3  ;;  %v861_v5 = vstv %s1828_s26  ;;  %s3101_s14 = sld [smem:[#allocation18_spill]]  ;;  %s1892_s9 = sshll.u32 %s3093_s5, 1 }
  0x7d   : > { %2010 = vmatprep.subr.bf16.mxu1 %v2311_v7  ;;  %v499_v23 = vor.u32 %v498_v21, %v494_v16  ;;  %v731_v36 = vsel %vm728_vm1, %v729_v32, %v730_v33  ;;  %v2337_v48 = vld [vmem:[#allocation7 + $0x68] sm:$0xff]   ;;  %v2338_v49 = vld [vmem:[#allocation7 + $0x20] sm:$0xff]   ;;  %v2340_v51 = vld [vmem:[#allocation7 + $0x18] sm:$0xff]   ;;  %s3102_s19 = sld [smem:[#allocation29_spill]]  ;;  %s2490_s24 = sshll.u32 %s2624_s10, 4  ;;  %s2491_s24 = int_to_ptr.vmem [resolvable:$false] %s2490_s24 }
  0x7e   : > { %v2339_v50 = vld [vmem:[#allocation7 + $0x60] sm:$0xff]   ;;  %v2341_v52 = vld [vmem:[#allocation7 + $0x58] sm:$0xff]   ;;  %v2342_v53 = vld [vmem:[#allocation7 + $0x10] sm:$0xff]   ;;  %s3105_s2 = sld [smem:[#allocation31_spill]] }
  0x7f   : > { %1991 = vmatpush3.bf16.msra.mxu0 %v2310_v6  ;;  %v504_v26 = vsel %vm492_vm0, %v499_v23, %v503_v22  ;;  %v2343_v54 = vld [vmem:[#allocation7 + $0x50] sm:$0xff]   ;;  %v2344_v55 = vld [vmem:[#allocation7 + $0x8] sm:$0xff]   ;;  %v2346_v57 = vld [vmem:[#allocation7] sm:$0xff]  }
  0x80   : > { %2011 = vmatpush3.bf16.msra.mxu1 %v2311_v7  ;;  %1992 = vmatprep.subr.bf16.mxu0 %v2312_v8  ;;  %v2345_v56 = vld [vmem:[#allocation7 + $0x48] sm:$0xff]   ;;  %v2347_v58 = vld [vmem:[#allocation7 + $0x40] sm:$0xff]   ;;  %v2888_v59 = vld [vmem:[#allocation7 + $0xb8] sm:$0xff]  }
  0x81   : > { %2012 = vmatprep.subr.bf16.mxu1 %v2313_v9  ;;  %2000 = vmatprep.mubr.bf16.mxu0 %v504_v26  ;;  %v1827_v15 = vld [vmem:[%s3095_s29] ss:$0 sm:$0xff]  ;;  %v2367_v2 = vld [vmem:[#allocation8 + $0x8] sm:$0xff]   ;;  %s439_s11 = sand.u32 1, %s3100_s13  }
  0x82   : > { %s2164_s26 = smul.u32 6, %s3101_s14  ;;  %s1796_s28 = sshll.u32 %s439_s11, 4 }
  0x83   : > { %1993 = vmatpush3.bf16.msra.mxu0 %v2312_v8  ;;  %s441_s4 = scalar_lea.vmem [#allocation10], %s1796_s28  ;;  %s2981_s13 = scalar_lea.sflag [#allocation4], %s439_s11 }
  0x84   : > { %2013 = vmatpush3.bf16.msra.mxu1 %v2313_v9  ;;  %1994 = vmatprep.subr.bf16.mxu0 %v2314_v10  ;;  %v1826_v9 = vld [vmem:[%s3094_s12] ss:$0 sm:$0xff]  ;;  %s3103_s12 = sld [smem:[#allocation30_spill]]  ;;  %s1660_s29 = sadd.s32 %s2164_s26, %s1892_s9 }
  0x85   : > { %2014 = vmatprep.subr.bf16.mxu1 %v2315_v11  ;;  %s1663_s7 = sshll.u32 %s441_s4, 4  ;;  %s2974_s7 = int_to_ptr.vmem [resolvable:$true] %s1663_s7 }
  0x86   : > { %s2486_s14 = scalar_lea.vmem %s2974_s7, 256  ;;  %p2493_p11 = scmp.lt.s32.totalorder %s2974_s7, %s2491_s24 }
  0x87   : > { %1995 = vmatpush3.bf16.msra.mxu0 %v2314_v10  ;;  %v2903_v10 = vadd.s32 8, %v2892_v3  ;;  %p2487_p1 = scmp.ne.s32.totalorder %s2974_s7, %s2486_s14 }
  0x88   : > { %2015 = vmatpush3.bf16.msra.mxu1 %v2315_v11  ;;  %1996 = vmatprep.subr.bf16.mxu0 %v2316_v19  ;;  %v864_v11 = vadd.s32 %v861_v5, %v2897_v4 }
  0x89   : > { %2016 = vmatprep.subr.bf16.mxu1 %v2317_v20  ;;  %v863_v21 = vadd.s32 %v861_v5, %v2903_v10 }
  0x8a   : > { %vm867_vm2 = vcmp.ge.s32.totalorder %v864_v11, 0  ;;  %vm870_vm3 = vcmp.lt.s32.totalorder %v864_v11, 40 }
  0x8b   : > { %1997 = vmatpush3.bf16.msra.mxu0 %v2316_v19  ;;  %vm866_vm4 = vcmp.ge.s32.totalorder %v863_v21, 0  ;;  %vm869_vm5 = vcmp.lt.s32.totalorder %v863_v21, 40  ;;  %vm2911_vm6 = vmand %vm867_vm2, %vm870_vm3 }
  0x8c   : > { %2017 = vmatpush3.bf16.msra.mxu1 %v2317_v20  ;;  %1998 = vmatprep.subr.bf16.mxu0 %v2318_v24  ;;  %v862_v20 = vadd.s32 %v861_v5, %v2892_v3  ;;  %vm872_vm9 = vmand %vm866_vm4, %vm869_vm5  ;;  %v2368_v5 = vld [vmem:[#allocation8 + $0x50] sm:$0xff]  }
  0x8d   : > { %2018 = vmatprep.subr.bf16.mxu1 %v2319_v25  ;;  %vm1848_vm12 = vmpackc.low %vm2911_vm6, %vm2911_vm6 }
  0x8e   : > { %vm865_vm7 = vcmp.ge.s32.totalorder %v862_v20, 0  ;;  %vm868_vm8 = vcmp.lt.s32.totalorder %v862_v20, 40  ;;  %v1859_v20 = vld [vmem:[%s3098_s6] ss:$0 sm:$0xff]  ;;  %s1893_s6 = sshll.u32 %s1660_s29, 7 }
  0x8f   : > { %1999 = vmatpush3.bf16.msra.mxu0 %v2318_v24  ;;  %vm871_vm10 = vmand %vm865_vm7, %vm868_vm8 }
  0x90   : > { %2019 = vmatpush3.bf16.msra.mxu1 %v2319_v25  ;;  %2024 = vmatprep.subr.bf16.mxu0 %v2323_v28  ;;  %vm1845_vm11 = vmpackc.low %vm872_vm9, %vm871_vm10 }
  0x91   : > { %2044 = vmatprep.subr.bf16.mxu1 %v2333_v44 }
  0x92   : > { %2001 = vmatmul.mubr.bf16.vlgmr.msra.gmra.mxu0 %v507_v34 }
  0x93   : > { %2021 = vmatmul.mubr.bf16.vlgmr.msra.gmra.mxu1 %v2322_v31  ;;  %2025 = vmatpush3.bf16.msra.mxu0 %v2323_v28 }
  0x94   : > { %2026 = vmatprep.subr.bf16.mxu0 %v2324_v35  ;;  %2040 = vmatprep.mubr.bf16.mxu0 %v731_v36 }
  0x95   : > { %2045 = vmatpush3.bf16.msra.mxu1 %v2333_v44 }
  0x96   : > { %2046 = vmatprep.subr.bf16.mxu1 %v2335_v46 }
  0x97   : > { %2027 = vmatpush3.bf16.msra.mxu0 %v2324_v35 }
  0x98   : > { %2028 = vmatprep.subr.bf16.mxu0 %v2325_v37 }
  0x99   : > { %2047 = vmatpush3.bf16.msra.mxu1 %v2335_v46  ;;  %v2349_v46 = vld [vmem:[#allocation7 + $0xb0] sm:$0xff]  }
  0x9a   : > { %2048 = vmatprep.subr.bf16.mxu1 %v2337_v48 }
  0x9b   : > { %2029 = vmatpush3.bf16.msra.mxu0 %v2325_v37 }
  0x9c   : > { %2030 = vmatprep.subr.bf16.mxu0 %v2326_v38 }
  0x9d   : > { %2049 = vmatpush3.bf16.msra.mxu1 %v2337_v48  ;;  %v2350_v48 = vld [vmem:[#allocation7 + $0xa8] sm:$0xff]  }
  0x9e   : > { %2050 = vmatprep.subr.bf16.mxu1 %v2339_v50 }
  0x9f   : > { %2031 = vmatpush3.bf16.msra.mxu0 %v2326_v38 }
  0xa0   : > { %2032 = vmatprep.subr.bf16.mxu0 %v2327_v39 }
  0xa1   : > { %2051 = vmatpush3.bf16.msra.mxu1 %v2339_v50  ;;  %v2352_v50 = vld [vmem:[#allocation7 + $0x98] sm:$0xff]  }
  0xa2   : > { %2052 = vmatprep.subr.bf16.mxu1 %v2341_v52 }
  0xa3   : > { %2033 = vmatpush3.bf16.msra.mxu0 %v2327_v39 }
  0xa4   : > { %2034 = vmatprep.subr.bf16.mxu0 %v2328_v40 }
  0xa5   : > { %2053 = vmatpush3.bf16.msra.mxu1 %v2341_v52  ;;  %v2354_v52 = vld [vmem:[#allocation7 + $0x88] sm:$0xff]  }
  0xa6   : > { %2054 = vmatprep.subr.bf16.mxu1 %v2343_v54 }
  0xa7   : > { %2035 = vmatpush3.bf16.msra.mxu0 %v2328_v40 }
  0xa8   : > { %2036 = vmatprep.subr.bf16.mxu0 %v2329_v41 }
  0xa9   : > { %2055 = vmatpush3.bf16.msra.mxu1 %v2343_v54  ;;  %v2356_v54 = vld [vmem:[#allocation8 + $0x38] sm:$0xff]  }
  0xaa   : > { %2056 = vmatprep.subr.bf16.mxu1 %v2345_v56 }
  0xab   : > { %2037 = vmatpush3.bf16.msra.mxu0 %v2329_v41 }
  0xac   : > { %2038 = vmatprep.subr.bf16.mxu0 %v2330_v42 }
  0xad   : > { %2057 = vmatpush3.bf16.msra.mxu1 %v2345_v56  ;;  %v2622_v56 = vmov 0.0  }
  0xae   : > { %2058 = vmatprep.subr.bf16.mxu1 %v2347_v58 }
  0xaf   : > { %2039 = vmatpush3.bf16.msra.mxu0 %v2330_v42 }
  0xb0   : > { %2064 = vmatprep.subr.bf16.mxu0 %v2332_v43 }
  0xb1   : > { %2059 = vmatpush3.bf16.msra.mxu1 %v2347_v58  ;;  %v2360_v58 = vld [vmem:[#allocation8 + $0x70] sm:$0xff]  }
  0xb2   : > { %2041 = vmatmul.mubr.bf16.vlgmr.msra.gmra.mxu0 %v730_v33  ;;  %2084 = vmatprep.subr.bf16.mxu1 %v2888_v59 }
  0xb3   : > { %2065 = vmatpush3.bf16.msra.mxu0 %v2332_v43 }
  0xb4   : > { %2066 = vmatprep.subr.bf16.mxu0 %v2334_v45 }
  0xb7   : > { %2067 = vmatpush3.bf16.msra.mxu0 %v2334_v45 }
  0xb8   : > { %2068 = vmatprep.subr.bf16.mxu0 %v2336_v47 }
  0xbb   : > { %2069 = vmatpush3.bf16.msra.mxu0 %v2336_v47 }
  0xbc   : > { %2070 = vmatprep.subr.bf16.mxu0 %v2338_v49 }
  0xbf   : > { %2071 = vmatpush3.bf16.msra.mxu0 %v2338_v49  ;;  %v2351_v49 = vld [vmem:[#allocation7 + $0xa0] sm:$0xff]  }
  0xc0   : > { %2072 = vmatprep.subr.bf16.mxu0 %v2340_v51 }
  0xc3   : > { %2073 = vmatpush3.bf16.msra.mxu0 %v2340_v51  ;;  %v2353_v51 = vld [vmem:[#allocation7 + $0x90] sm:$0xff]  }
  0xc4   : > { %2074 = vmatprep.subr.bf16.mxu0 %v2342_v53 }
  0xc7   : > { %2075 = vmatpush3.bf16.msra.mxu0 %v2342_v53  ;;  %v2355_v53 = vld [vmem:[#allocation7 + $0x80] sm:$0xff]  }
  0xc8   : > { %2076 = vmatprep.subr.bf16.mxu0 %v2344_v55 }
  0xcb   : > { %2077 = vmatpush3.bf16.msra.mxu0 %v2344_v55  ;;  %v2358_v55 = vld [vmem:[#allocation8 + $0x78] sm:$0xff]  }
  0xcc   : > { %2078 = vmatprep.subr.bf16.mxu0 %v2346_v57 }
  0xcf   : > { %2079 = vmatpush3.bf16.msra.mxu0 %v2346_v57  ;;  %v2357_v57 = vld [vmem:[#allocation8 + $0x30] sm:$0xff]  }
  0xd0   : > { %2104 = vmatprep.subr.bf16.mxu0 %v2622_v56 }
 0x152   : > { %v2002_v60 = vpop.f32.mrf.mxu0 }
 0x153   : > { %v2022_v61 = vpop.f32.mrf.mxu1 }
 0x154   : > { %v592_v62 = vpop.f32.mrf.mxu0  ;;  %v702_v7 = vadd.f32 %v2022_v61, %v2002_v60  ;;  %v2361_v60 = vld [vmem:[#allocation8 + $0x20] sm:$0xff]   ;;  %v2362_v61 = vld [vmem:[#allocation8 + $0x68] sm:$0xff]  }
 0x155   : > { %v693_v63 = vpop.f32.mrf.mxu1 }
 0x156   : > { %v2003_v0 = vpop.f32.mrf.mxu0  ;;  %v694_v12 = vadd.f32 %v693_v63, %v592_v62  ;;  %v2363_v62 = vld [vmem:[#allocation8 + $0x18] sm:$0xff]   ;;  %v2364_v63 = vld [vmem:[#allocation8 + $0x60] sm:$0xff]  }
 0x157   : > { %v2023_v1 = vpop.f32.mrf.mxu1  ;;  %v2365_v0 = vld [vmem:[#allocation8 + $0x10] sm:$0xff]  }
 0x158   : > { %v595_v6 = vpop.f32.mrf.mxu0  ;;  %v2366_v1 = vld [vmem:[#allocation8 + $0x58] sm:$0xff]  }
 0x159   : > { %v696_v14 = vpop.f32.mrf.mxu1 }
 0x15a   : > { %v697_v22 = vadd.f32 %v696_v14, %v595_v6  ;;  %v2369_v6 = vld [vmem:[#allocation8] sm:$0xff]  }
 0x172   : > { %v2042_v8 = vpop.f32.mrf.mxu0 }
 0x173   : > { %v832_v13 = vadd.f32 %v2042_v8, %v702_v7  ;;  %v2370_v7 = vld [vmem:[#allocation8 + $0x48] sm:$0xff]   ;;  %v2371_v8 = vld [vmem:[#allocation8 + $0x40] sm:$0xff]  }
 0x174   : > { %v816_v16 = vpop.f32.mrf.mxu0 }
 0x175   : > { %v842_v17 = vmul.f32 %v1826_v9, %v832_v13  ;;  %v830_v18 = vadd.f32 %v816_v16, %v694_v12  ;;  %v1263_v16 = vstv %s1861_s1  ;;  %s3104_s1 = sld [smem:[#allocation20_spill]] }
 0x176   : > { %v2043_v19 = vpop.f32.mrf.mxu0  ;;  %v1266_v21 = vadd.s32 %v1263_v16, %v2897_v4  ;;  %v1264_v4 = vadd.s32 %v1263_v16, %v2892_v3 }
 0x177   : > { %v852_v23 = vadd.f32 %v1827_v15, %v842_v17  ;;  %v840_v24 = vmul.f32 %v1826_v9, %v830_v18 }
 0x178   : > { %v819_v25 = vpop.f32.mrf.mxu0  ;;  %vm1269_vm15 = vcmp.ge.s32.totalorder %v1266_v21, 0  ;;  %vm1272_vm2 = vcmp.lt.s32.totalorder %v1266_v21, 40  ;;  %vm1270_vm7 = vcmp.lt.s32.totalorder %v1264_v4, 40 }
 0x179   : > { %v855_v26 = vmax.f32 %v852_v23, 0.0  ;;  %v850_v27 = vadd.f32 %v1827_v15, %v840_v24  ;;  %v831_v28 = vadd.f32 %v819_v25, %v697_v22  ;;  %v1860_v24 = vld [vmem:[%s3099_s3] ss:$0 sm:$0xff]  ;;  %vm1275_vm3 = vmand %vm1269_vm15, %vm1272_vm2  ;;  %s2979_s3 = scalar_lea.hbm %s3105_s2, %s1893_s6 }
 0x17b   : > { %v841_v30 = vmul.f32 %v1826_v9, %v831_v28  ;;  %v853_v31 = vmax.f32 %v850_v27, 0.0  ;;  %v882_v33 = vsel %vm2911_vm6, %v855_v26, 0.0  ;;  %v1849_v39 = vpack.c.bf16 %v855_v26, %v855_v26  ;;  %p3106_p4 = scmp.ne.s32.totalorder %s3104_s1, 0 }
 0x17c   : > { %v884_v35 = vpack.c.bf16 %v882_v33, %v882_v33  ;;  %vm1267_vm6 = vcmp.ge.s32.totalorder %v1264_v4, 0 }
 0x17d   : > { %v851_v32 = vadd.f32 %v1827_v15, %v841_v30  ;;  %v880_v37 = vsel %vm871_vm10, %v853_v31, 0.0  ;;  %v1265_v30 = vadd.s32 %v1263_v16, %v2903_v10  ;;  %p2488_p6 = pnand %p2487_p1, %p3106_p4 }
 0x17e   : > { %v921_v42 = vrot.slane %v884_v35, 1  ;;  %v1136_v45 = vrot.slane %v884_v35, 2 }
 0x17f   : > { %v854_v34 = vmax.f32 %v851_v32, 0.0  ;;  %vm1268_vm4 = vcmp.ge.s32.totalorder %v1265_v30, 0  ;;  %vm1271_vm5 = vcmp.lt.s32.totalorder %v1265_v30, 40  ;;  %p2489_p10 = pneg %p2488_p6 }
 0x180   : > { %vm1274_vm8 = vmand %vm1268_vm4, %vm1271_vm5 }
 0x181   : > { %v1846_v36 = vpack.c.bf16 %v854_v34, %v853_v31  ;;  %v881_v38 = vsel %vm872_vm9, %v854_v34, 0.0  ;;  %vm1273_vm9 = vmand %vm1267_vm6, %vm1270_vm7 }
 0x182   : > { %v883_v40 = vpack.c.bf16 %v881_v38, %v880_v37  ;;  %vm1878_vm10 = vmpackc.low %vm1274_vm8, %vm1273_vm9 }
 0x183   : > { %2080 = vmatprep.mubr.msk.bf16.mxu0 %vm1845_vm11, %v1846_v36 }
 0x184   : > { %2081 = vmatmul.mubr.msk.bf16.vlgmr.msra.gmra.mxu0 %vm1848_vm12, %v1849_v39  ;;  %v920_v41 = vrot.slane %v883_v40, 1  ;;  %v1135_v43 = vrot.slane %v883_v40, 2 }
 0x185   : > { %2105 = vmatpush3.bf16.msra.mxu0 %v2358_v55  ;;  %2120 = vmatprep.mubr.msk.bf16.mxu0 %vm2623_vm14, %v2622_v56  ;;  %v2374_v55 = vld [vmem:[#allocation8 + $0xa8] sm:$0xff]  }
 0x186   : > { %v922_v44 = vsel %vm728_vm1, %v920_v41, %v921_v42  ;;  %v1137_v47 = vsel %vm1134_vm13, %v1135_v43, %v1136_v45  ;;  %2106 = vmatprep.subr.bf16.mxu0 %v2622_v56 }
 0x187   : > { %2060 = vmatprep.mubr.bf16.mxu1 %v922_v44 }
 0x188   : > { %2061 = vmatmul.mubr.bf16.vlgmr.msra.gmra.mxu1 %v921_v42 }
 0x189   : > { %2085 = vmatpush3.bf16.msra.mxu1 %v2888_v59  ;;  %2100 = vmatprep.mubr.bf16.mxu1 %v1137_v47  ;;  %v2359_v59 = vld [vmem:[#allocation8 + $0x28] sm:$0xff]  }
 0x18a   : > { %2086 = vmatprep.subr.bf16.mxu1 %v2349_v46  ;;  %2107 = vmatpush3.bf16.msra.mxu0 %v2360_v58  ;;  %v2376_v58 = vld [vmem:[#allocation8 + $0x98] sm:$0xff]  }
 0x18b   : > { %2108 = vmatprep.subr.bf16.mxu0 %v2622_v56 }
 0x18d   : > { %2087 = vmatpush3.bf16.msra.mxu1 %v2349_v46 }
 0x18e   : > { %2088 = vmatprep.subr.bf16.mxu1 %v2350_v48  ;;  %2109 = vmatpush3.bf16.msra.mxu0 %v2362_v61  ;;  %v2379_v61 = vld [vmem:[#allocation8 + $0x80] sm:$0xff]  }
 0x18f   : > { %2110 = vmatprep.subr.bf16.mxu0 %v2622_v56 }
 0x191   : > { %2089 = vmatpush3.bf16.msra.mxu1 %v2350_v48 }
 0x192   : > { %2090 = vmatprep.subr.bf16.mxu1 %v2351_v49  ;;  %2111 = vmatpush3.bf16.msra.mxu0 %v2364_v63 }
 0x193   : > { %2112 = vmatprep.subr.bf16.mxu0 %v2622_v56 }
 0x195   : > { %2091 = vmatpush3.bf16.msra.mxu1 %v2351_v49 }
 0x196   : > { %2092 = vmatprep.subr.bf16.mxu1 %v2352_v50  ;;  %2113 = vmatpush3.bf16.msra.mxu0 %v2366_v1 }
 0x197   : > { %2114 = vmatprep.subr.bf16.mxu0 %v2622_v56 }
 0x199   : > { %2093 = vmatpush3.bf16.msra.mxu1 %v2352_v50 }
 0x19a   : > { %2094 = vmatprep.subr.bf16.mxu1 %v2353_v51  ;;  %2115 = vmatpush3.bf16.msra.mxu0 %v2368_v5 }
 0x19b   : > { %2116 = vmatprep.subr.bf16.mxu0 %v2622_v56 }
 0x19d   : > { %2095 = vmatpush3.bf16.msra.mxu1 %v2353_v51 }
 0x19e   : > { %2096 = vmatprep.subr.bf16.mxu1 %v2354_v52  ;;  %2117 = vmatpush3.bf16.msra.mxu0 %v2370_v7 }
 0x19f   : > { %2118 = vmatprep.subr.bf16.mxu0 %v2622_v56 }
 0x1a1   : > { %2097 = vmatpush3.bf16.msra.mxu1 %v2354_v52  ;;  %v2372_v52 = vld [vmem:[#allocation8 + $0xb8] sm:$0xff]  }
 0x1a2   : > { %2098 = vmatprep.subr.bf16.mxu1 %v2355_v53  ;;  %2119 = vmatpush3.bf16.msra.mxu0 %v2371_v8 }
 0x1a3   : > { %2144 = vmatprep.subr.bf16.mxu0 %v2622_v56 }
 0x1a5   : > { %2099 = vmatpush3.bf16.msra.mxu1 %v2355_v53 }
 0x1a6   : > { %2124 = vmatprep.subr.bf16.mxu1 %v2622_v56 }
 0x1a8   : > { %2101 = vmatmul.mubr.bf16.vlgmr.msra.gmra.mxu1 %v1136_v45 }
 0x1a9   : > { %2125 = vmatpush3.bf16.msra.mxu1 %v2356_v54  ;;  %2140 = vmatprep.mubr.msk.bf16.mxu1 %vm2623_vm14, %v2622_v56  ;;  %v2373_v54 = vld [vmem:[#allocation8 + $0xb0] sm:$0xff]  }
 0x1aa   : > { %2126 = vmatprep.subr.bf16.mxu1 %v2622_v56 }
 0x1ad   : > { %2127 = vmatpush3.bf16.msra.mxu1 %v2357_v57  ;;  %v2375_v57 = vld [vmem:[#allocation8 + $0xa0] sm:$0xff]  }
 0x1ae   : > { %2128 = vmatprep.subr.bf16.mxu1 %v2622_v56 }
 0x1b1   : > { %2129 = vmatpush3.bf16.msra.mxu1 %v2359_v59  ;;  %v2377_v59 = vld [vmem:[#allocation8 + $0x90] sm:$0xff]  }
 0x1b2   : > { %2130 = vmatprep.subr.bf16.mxu1 %v2622_v56 }
 0x1b5   : > { %2131 = vmatpush3.bf16.msra.mxu1 %v2361_v60  ;;  %v2378_v60 = vld [vmem:[#allocation8 + $0x88] sm:$0xff]  }
 0x1b6   : > { %2132 = vmatprep.subr.bf16.mxu1 %v2622_v56 }
 0x1b9   : > { %2133 = vmatpush3.bf16.msra.mxu1 %v2363_v62 }
 0x1ba   : > { %2134 = vmatprep.subr.bf16.mxu1 %v2622_v56 }
 0x1bd   : > { %2135 = vmatpush3.bf16.msra.mxu1 %v2365_v0 }
 0x1be   : > { %2136 = vmatprep.subr.bf16.mxu1 %v2622_v56 }
 0x1c1   : > { %2137 = vmatpush3.bf16.msra.mxu1 %v2367_v2 }
 0x1c2   : > { %2138 = vmatprep.subr.bf16.mxu1 %v2622_v56 }
 0x1c5   : > { %2139 = vmatpush3.bf16.msra.mxu1 %v2369_v6 }
 0x244   : > { %v2082_v9 = vpop.f32.mrf.mxu0 }
 0x246   : > { %v1103_v11 = vpop.f32.mrf.mxu0 }
 0x248   : > { %v2062_v12 = vpop.f32.mrf.mxu1  ;;  %v2083_v13 = vpop.f32.mrf.mxu0 }
 0x249   : > { %v1112_v18 = vadd.f32 %v2082_v9, %v2062_v12 }
 0x24a   : > { %v1007_v14 = vpop.f32.mrf.mxu1  ;;  %v1106_v28 = vpop.f32.mrf.mxu0 }
 0x24b   : > { %v1104_v22 = vadd.f32 %v1103_v11, %v1007_v14 }
 0x24c   : > { %v2063_v15 = vpop.f32.mrf.mxu1 }
 0x24d   : > { %v1890_v15 = vld [vmem:[%s3103_s12] ss:$0 sm:$0xff] }
 0x24e   : > { %v1010_v17 = vpop.f32.mrf.mxu1 }
 0x24f   : > { %v1107_v31 = vadd.f32 %v1106_v28, %v1010_v17 }
 0x268   : > { %v2102_v19 = vpop.f32.mrf.mxu1 }
 0x269   : > { %v1238_v23 = vadd.f32 %v2102_v19, %v1112_v18 }
 0x26a   : > { %v1222_v25 = vpop.f32.mrf.mxu1 }
 0x26b   : > { %v1248_v26 = vmul.f32 %v1859_v20, %v1238_v23  ;;  %v1236_v27 = vadd.f32 %v1222_v25, %v1104_v22 }
 0x26c   : > { %v2103_v29 = vpop.f32.mrf.mxu1 }
 0x26d   : > { %v1258_v32 = vadd.f32 %v1860_v24, %v1248_v26  ;;  %v1246_v33 = vmul.f32 %v1859_v20, %v1236_v27 }
 0x26e   : > { %v1225_v34 = vpop.f32.mrf.mxu1 }
 0x26f   : > { %v1261_v35 = vmax.f32 %v1258_v32, 0.0  ;;  %v1256_v36 = vadd.f32 %v1860_v24, %v1246_v33  ;;  %v1237_v37 = vadd.f32 %v1225_v34, %v1107_v31 }
 0x271   : > { %v1247_v38 = vmul.f32 %v1859_v20, %v1237_v37  ;;  %v1284_v39 = vsel %vm1275_vm3, %v1261_v35, 0.0  ;;  %v1259_v40 = vmax.f32 %v1256_v36, 0.0 }
 0x272   : > { %v1286_v42 = vpack.c.bf16 %v1284_v39, %v1284_v39 }
 0x273   : > { %v1257_v41 = vadd.f32 %v1860_v24, %v1247_v38  ;;  %v1282_v3 = vsel %vm1273_vm9, %v1259_v40, 0.0 }
 0x274   : > { %v1328_v47 = vshll.u32 %v1286_v42, 16  ;;  %v1531_v63 = vrot.slane %v1286_v42, 1 }
 0x275   : > { %v1260_v10 = vmax.f32 %v1257_v41, 0.0 }
 0x276   : > { %v1330_v51 = vrot.slane %v1328_v47, 1 }
 0x277   : > { %v1879_v43 = vpack.c.bf16 %v1260_v10, %v1259_v40  ;;  %v1283_v44 = vsel %vm1274_vm8, %v1260_v10, 0.0 }
 0x278   : > { %v1285_v45 = vpack.c.bf16 %v1283_v44, %v1282_v3 }
 0x279   : > { %2141 = vmatmul.mubr.msk.bf16.vlgmr.msra.gmra.mxu1 %vm1878_vm10, %v1879_v43 }
 0x27a   : > { %v1323_v46 = vshll.u32 %v1285_v45, 16  ;;  %v1321_v48 = vshrl.u32 %v1285_v45, 16  ;;  %v1530_v62 = vrot.slane %v1285_v45, 1 }
 0x27c   : > { %v1325_v49 = vrot.slane %v1323_v46, 1  ;;  %v1532_v0 = vsel %vm728_vm1, %v1530_v62, %v1531_v63 }
 0x27e   : > { %v1326_v50 = vor.u32 %v1325_v49, %v1321_v48 }
 0x280   : > { %v1331_v53 = vsel %vm492_vm0, %v1326_v50, %v1330_v51 }
 0x281   : > { %2121 = vmatmul.mubr.bf16.vlgmr.msra.gmra.mxu0 %v1331_v53 }
 0x282   : > { %2145 = vmatpush3.bf16.msra.mxu0 %v2372_v52  ;;  %2160 = vmatprep.mubr.msk.bf16.mxu0 %vm2623_vm14, %v2622_v56 }
 0x283   : > { %2146 = vmatprep.subr.bf16.mxu0 %v2622_v56 }
 0x286   : > { %2147 = vmatpush3.bf16.msra.mxu0 %v2373_v54 }
 0x287   : > { %2148 = vmatprep.subr.bf16.mxu0 %v2622_v56 }
 0x28a   : > { %2149 = vmatpush3.bf16.msra.mxu0 %v2374_v55 }
 0x28b   : > { %2150 = vmatprep.subr.bf16.mxu0 %v2622_v56 }
 0x28e   : > { %2151 = vmatpush3.bf16.msra.mxu0 %v2375_v57 }
 0x28f   : > { %2152 = vmatprep.subr.bf16.mxu0 %v2622_v56 }
 0x292   : > { %2153 = vmatpush3.bf16.msra.mxu0 %v2376_v58 }
 0x293   : > { %2154 = vmatprep.subr.bf16.mxu0 %v2622_v56 }
 0x296   : > { %2155 = vmatpush3.bf16.msra.mxu0 %v2377_v59 }
 0x297   : > { %2156 = vmatprep.subr.bf16.mxu0 %v2622_v56 }
 0x29a   : > { %2157 = vmatpush3.bf16.msra.mxu0 %v2378_v60 }
 0x29b   : > { %2158 = vmatprep.subr.bf16.mxu0 %v2622_v56  ;;  %v1889_v56 = vld [vmem:[%s3102_s19] ss:$0 sm:$0xff]  ;;  %s2492_s19 = scalar_lea.vmem %s2491_s24, 512 }
 0x29c   : > { %p2494_p13 = scmp.lt.s32.totalorder %s2492_s19, %s2486_s14 }
 0x29e   : > { %2159 = vmatpush3.bf16.msra.mxu0 %v2379_v61  ;;  %p2495_p5 = por %p2494_p13, %p2493_p11 }
 0x2a0   : > { %p2496_p12 = pnand %p2495_p5, %p2489_p10 }
 0x2a1   : > { %2161 = vmatmul.mubr.bf16.vlgmr.msra.gmra.mxu0 %v1532_v0 }
 0x339   : > { %v1504_v1 = vpop.f32.mrf.mxu1 }
 0x33b   : > { %v2142_v2 = vpop.f32.mrf.mxu1 }
 0x33d   : > { %v1507_v5 = vpop.f32.mrf.mxu1 }
 0x33f   : > { %v2143_v6 = vpop.f32.mrf.mxu1 }
 0x341   : > { %v1415_v7 = vpop.f32.mrf.mxu0 }
 0x342   : > { %v1505_v12 = vadd.f32 %v1504_v1, %v1415_v7 }
 0x343   : > { %v2122_v8 = vpop.f32.mrf.mxu0 }
 0x345   : > { %v1418_v9 = vpop.f32.mrf.mxu0 }
 0x346   : > { %v1508_v17 = vadd.f32 %v1507_v5, %v1418_v9 }
 0x347   : > { %v2123_v11 = vpop.f32.mrf.mxu0 }
 0x361   : > { %v1616_v13 = vpop.f32.mrf.mxu0 }
 0x362   : > { %v1623_v14 = vadd.f32 %v1616_v13, %v1505_v12 }
 0x363   : > { %v2162_v16 = vpop.f32.mrf.mxu0 }
 0x364   : > { %v1632_v18 = vmul.f32 %v1889_v56, %v1623_v14 }
 0x365   : > { %v1619_v19 = vpop.f32.mrf.mxu0 }
 0x366   : > { %v1641_v20 = vadd.f32 %v1890_v15, %v1632_v18  ;;  %v1624_v21 = vadd.f32 %v1619_v19, %v1508_v17 }
 0x367   : > { %v2163_v22 = vpop.f32.mrf.mxu0 }
 0x368   : > { %v1643_v23 = vmax.f32 %v1641_v20, 0.0  ;;  %v1633_v24 = vmul.f32 %v1889_v56, %v1624_v21 }
 0x36a   : > { %1645 = vst [vmem:[%s441_s4] sm:$0xff] %v1643_v23  ;;  %v1642_v25 = vadd.f32 %v1890_v15, %v1633_v24 }
 0x36c   : > { %v1644_v26 = vmax.f32 %v1642_v25, 0.0 }
 0x36e   : > { %1646 = vst [vmem:[%s441_s4 + $0x8] sm:$0xff] %v1644_v26 }
 0x36f   : > { %2499 = shalt.err (!%p2496_p12)
}
 0x370   : > { %s2500_s11 = scalar_lea.hbm %s2979_s3, 256  ;;  %s2504_s30 = scalar_lea.hbm %s3105_s2, 1536 }
 0x371   : > { %p2501_p0 = scmp.ne.s32.totalorder %s2979_s3, %s2500_s11  ;;  %p2505_p7 = scmp.lt.s32.totalorder %s2979_s3, %s3105_s2 }
 0x372   : > { %p2506_p8 = scmp.lt.s32.totalorder %s2504_s30, %s2500_s11 }
 0x373   : > { %p2502_p2 = pnand %p2501_p0, %p3106_p4 }
 0x374   : > { %p2507_p9 = por %p2506_p8, %p2505_p7 }
 0x375   : > { %p2503_p3 = pneg %p2502_p2 }
 0x377   : > { %p2508_p1 = pnand %p2507_p9, %p2503_p3 }
 0x379   : > { %2511 = shalt.err (!%p2508_p1)
}
 0x37a   : > { %s2625_s28 = smov 128   ;;  %s2626_s29 = smov 8  }
 0x37b   : > { %2179 = dma.vmem_to_hbm [thread:$0]  (%p3106_p4), %s2974_s7, 256, %s2979_s3, %s2981_s13, %s2625_s28, %s2625_s28, %s2626_s29  }
 0x37c PF: > { %s3107_s4 = sld [smem:[#allocation15_spill]]  ;;  %p2206_p6 = scmp.ge.s32.totalorder %s2614_s23, 2 }
 0x37d   : > { %s3108_s6 = sld [smem:[#allocation21_spill]] }
 0x382   : > { %s1678_s5 = sand.u32 1, %s3107_s4  }
 0x383   : > { %p3109_p10 = scmp.ne.s32.totalorder %s3108_s6, 0  ;;  %s1679_s8 = scalar_lea.sflag [#allocation4], %s1678_s5 }
 0x385   : > { %p2196_p11 = pnand %p2206_p6, %p3109_p10 }
 0x387   : > { %p2197_p13 = pneg %p2196_p11 }
 0x389   : > { %2569 = dma.done.wait (%p2197_p13), %s1679_s8, 256  }
 0x38a   : > { %2571 = vsyncadd (%p2197_p13), %s1679_s8, 4294967040  ;;  %s28_s23 = sadd.s32 1, %s2614_s23   ;;  %s3110_s13 = sld [smem:[#allocation16_spill]] }
 0x38b   : > { %p25_p5 = scmp.ge.s32.totalorder %s28_s23, 8   ;;  %s3111_s19 = sld [smem:[#allocation19_spill]] }
 0x38c   : > { %s3112_s1 = smov %s3122_s16  ;;  %s3113_s14 = smov %s2582_s15 }
 0x38d   : > { %s3114_s15 = smov %s2836_s20  ;;  %s3115_s16 = smov %s2590_s17 }
 0x38e   : > { %s3116_s17 = smov %s2594_s18  ;;  %s3117_s18 = smov %s2839_s21 }
 0x38f   : > { %s3118_s20 = smov %s2610_s22  ;;  %s3119_s21 = smov %s3112_s1 }
 0x390   : > { %s3120_s22 = smov %s3126_s25  ;;  %27 = sbr.rel (!%p25_p5) target bundleno = 22 (0x16), region = 123 }
 0x395   :  { %1684 = vsyncpa [#allocation3], 1 }
 0x396   :  { %1686 = vsyncpa [#allocation3 + $0x1], 1 }
 0x397   :  { %1687 = vsyncpa [#allocation6], 1 }
 0x398   :  { %1688 = vsyncpa [#allocation9], 1 }
 0x399   :  { %1689 = vsyncpa [#allocation4], 1 }
 0x39a   :  { %1691 = vsyncpa [#allocation4 + $0x1], 1 }

</bundles_post_ra>
